<compile_context>
chip_gen: v7x
topology: tpu7x:2x2x1
jax: 0.10.0
libtpu: 0.0.40
codegen_flags: <defaults>
</compile_context>

<pallas_src>
import functools

import jax
import jax.numpy as jnp
from jax.experimental import pallas as pl
from jax.experimental.pallas import tpu as pltpu


def _round_up(v, m):
    return (v + m - 1) // m * m


def _textcnn_kernel(x_ref, cw_ref, bm_ref, h0w_ref, h0b_ref, clw_ref, clb_ref, oht_ref,
                    loss_ref, pred_ref, *, tile_b, conv_len, fs_max, ncls_pad):
    # --- fused multi-width Conv1d -> ReLU -> max-pool, tap accumulation (no im2col) ---
    xv = x_ref[...]                                   # (tile_b, S_pad, C_in) bf16
    bm = bm_ref[...]                                  # (conv_len, NBC_PAD) f32 bias+validity
    pooled_rows = []
    # Static unroll over the batch tile keeps every op a plain 2-D slice / 2-D MXU dot
    # (no awkward reshapes).  For much larger tile_b, switch to lax.fori_loop + a VMEM
    # scratch for the pooled rows.
    for b in range(tile_b):
        acc = None
        for k in range(fs_max):                       # per-tap matmul, f32 accumulation
            xk = xv[b, k:k + conv_len, :]             # (conv_len, C_in) bf16
            d = jnp.dot(xk, cw_ref[k], preferred_element_type=jnp.float32)
            acc = d if acc is None else acc + d       # (conv_len, NBC_PAD) f32
        conv = jnp.maximum(acc + bm, 0.0)             # bias add + invalid->-1e30 + ReLU
        pooled_rows.append(jnp.max(conv, axis=0, keepdims=True))   # (1, NBC_PAD)
    pooled = jnp.concatenate(pooled_rows, axis=0)     # (tile_b, NBC_PAD) == concat(o1,o2,o3)

    # --- hidden0: Linear + ReLU (f32 operands; tiny matmul, keep off bf16 for v5e) ---
    h = jnp.dot(pooled, h0w_ref[...], preferred_element_type=jnp.float32) + h0b_ref[...]
    h = jnp.maximum(h, 0.0)
    # TODO(synk): nn.Dropout(p=0.2) reproduced as identity (eval mode); the training-time
    # random mask has no deterministic PyTorch-equivalent here.

    # --- classifier Linear (class axis padded to 128 lanes; pad bias = -1e30) ---
    logits = jnp.dot(h, clw_ref[...], preferred_element_type=jnp.float32) + clb_ref[...]

    # --- lane-dense epilogue: per-example CE loss + argmax as (1, tile_b) rows ---
    lt = logits.T                                     # (NCLS_PAD, tile_b)
    m = jnp.max(lt, axis=0, keepdims=True)            # (1, tile_b)
    lse = m + jnp.log(jnp.sum(jnp.exp(lt - m), axis=0, keepdims=True))
    picked = jnp.sum(lt * oht_ref[...], axis=0, keepdims=True)      # one-hot pick
    loss_ref[...] = lse - picked                      # per-example loss (mean in wrapper)

    cls_iota = jax.lax.broadcasted_iota(jnp.int32, lt.shape, 0)
    cand = jnp.where(lt == m, cls_iota, jnp.int32(ncls_pad))
    pred_ref[...] = jnp.min(cand, axis=0, keepdims=True).astype(jnp.int32)


def textcnn_forward(x_ncw, params, labels, *, filter_hs):
    """x_ncw: (B, C_in, S) float32 ; labels: (B,) int32 -> (mean loss, argmax preds)."""
    B, C_in, S = x_ncw.shape
    convs = params["convs"]
    C_out = convs[0][0].shape[0]
    n_branch = len(filter_hs)
    fs_max, fs_min = max(filter_hs), min(filter_hs)
    L = S - fs_min + 1                                # longest valid conv length
    S_pad = S + (fs_max - fs_min)                     # tail zero-pad for the longest filter
    H0 = params["h0_w"].shape[0]
    n_cls = params["cls_w"].shape[0]
    NBC = n_branch * C_out
    LANE = 128
    NBC_P = _round_up(NBC, LANE)                      # fused conv width -> lane-dense
    NCLS_P = _round_up(n_cls, LANE)                   # class axis -> lane-dense
    NEG = jnp.float32(-1e30)                          # finite "masked" value (no inf/NaN)

    # Batch tiling: pad to a sublane-friendly tile, grid over batch ("parallel").
    if B <= LANE:
        tile_b = _round_up(B, 8)
        Bp = tile_b
    else:                                             # keep output/one-hot blocks 128-lane
        tile_b = LANE
        Bp = _round_up(B, LANE)
    grid = (Bp // tile_b,)

    # --- wrapper-side layout glue (tiny, one-time) ---
    # x: (B, C_in, S) -> (Bp, S_pad, C_in) bf16, zero pad on batch and time tail.
    x_nsc = jnp.transpose(x_ncw, (0, 2, 1)).astype(jnp.float32)
    x_nsc = jnp.pad(x_nsc, ((0, Bp - B), (0, S_pad - S), (0, 0))).astype(jnp.bfloat16)

    # Merged per-tap conv weight: cw[k, i, col(b)+o] = w_b[o, i, k], zero past each fs.
    cw = jnp.zeros((fs_max, C_in, NBC_P), jnp.float32)
    col = 0
    for (w, _b), fs in zip(convs, filter_hs):
        wt = jnp.transpose(w, (2, 1, 0))              # (fs, C_in, C_out)
        cw = cw.at[:fs, :, col:col + C_out].set(wt)
        col += C_out
    cw = cw.astype(jnp.bfloat16)

    # Bias + validity mask folded into one additive (L, NBC_P) tensor.
    biasmask = jnp.full((L, NBC_P), NEG, jnp.float32)
    col = 0
    for (_w, b), fs in zip(convs, filter_hs):
        valid = S - fs + 1
        bm_branch = jnp.where(jnp.arange(L)[:, None] < valid, b[None, :], NEG)
        biasmask = biasmask.at[:, col:col + C_out].set(bm_branch)
        col += C_out

    # hidden0 / classifier weights (f32, zero-padded to the lane-dense widths).
    h0w = jnp.zeros((NBC_P, H0), jnp.float32).at[:NBC, :].set(params["h0_w"].T)
    h0b = params["h0_b"].reshape(1, H0).astype(jnp.float32)
    clw = jnp.zeros((H0, NCLS_P), jnp.float32).at[:, :n_cls].set(params["cls_w"].T)
    clb = jnp.full((1, NCLS_P), NEG, jnp.float32).at[0, :n_cls].set(params["cls_b"])

    # Labels as a lane-dense transposed one-hot (NCLS_P, Bp); padded rows stay all-zero.
    oh = jax.nn.one_hot(labels.astype(jnp.int32), NCLS_P, dtype=jnp.float32)   # (B, NCLS_P)
    ohT = jnp.zeros((NCLS_P, Bp), jnp.float32).at[:, :B].set(oh.T)

    kernel = functools.partial(_textcnn_kernel, tile_b=tile_b, conv_len=L,
                               fs_max=fs_max, ncls_pad=NCLS_P)

    loss_rows, pred_rows = pl.pallas_call(
        kernel,
        out_shape=(jax.ShapeDtypeStruct((1, Bp), jnp.float32),
                   jax.ShapeDtypeStruct((1, Bp), jnp.int32)),
        grid=grid,
        in_specs=[
            pl.BlockSpec((tile_b, S_pad, C_in), lambda i: (i, 0, 0)),   # x tile per step
            pl.BlockSpec((fs_max, C_in, NBC_P), lambda i: (0, 0, 0)),   # merged conv weights
            pl.BlockSpec((L, NBC_P), lambda i: (0, 0)),                 # bias+validity fold
            pl.BlockSpec((NBC_P, H0), lambda i: (0, 0)),                # hidden0 weight
            pl.BlockSpec((1, H0), lambda i: (0, 0)),                    # hidden0 bias
            pl.BlockSpec((H0, NCLS_P), lambda i: (0, 0)),               # classifier weight
            pl.BlockSpec((1, NCLS_P), lambda i: (0, 0)),                # classifier bias
            pl.BlockSpec((NCLS_P, tile_b), lambda i: (0, i)),           # one-hot labels
        ],
        out_specs=(pl.BlockSpec((1, tile_b), lambda i: (0, i)),         # per-example loss
                   pl.BlockSpec((1, tile_b), lambda i: (0, i))),        # per-example argmax
        compiler_params=pltpu.CompilerParams(
            dimension_semantics=("parallel",),
            # Explicit VMEM budget; tiles here are KB-scale, far under v7x's 64 MiB.
            vmem_limit_bytes=32 * 1024 * 1024),
    )(x_nsc, cw, biasmask, h0w, h0b, clw, clb, ohT)

    loss = jnp.mean(loss_rows[0, :B])                 # CrossEntropyLoss(reduction="mean")
    preds = pred_rows[0, :B]
    return loss, preds


def reference_forward(x, params, labels):
    outs = []
    for (w, b) in params["convs"]:
        fm = jax.lax.conv_general_dilated(
            x, w, window_strides=(1,), padding="VALID",
            dimension_numbers=("NCH", "OIH", "NCH")) + b[None, :, None]
        fm = jnp.maximum(fm, 0.0)
        outs.append(jnp.max(fm, axis=-1))
    feats = jnp.concatenate(outs, axis=1)
    h = jnp.maximum(feats @ params["h0_w"].T + params["h0_b"], 0.0)
    logits = h @ params["cls_w"].T + params["cls_b"]
    lse = jax.scipy.special.logsumexp(logits, axis=-1)
    picked = jnp.take_along_axis(logits, labels[:, None], axis=-1)[:, 0]
    return jnp.mean(lse - picked), jnp.argmax(logits, axis=-1)


if __name__ == "__main__":
    # cfg analogue: filter_hs = (3, 4, 5), hidden_units = (32, 5)
    B, C_in, S = 2, 4, 16
    filter_hs = (3, 4, 5)
    H0, n_cls = 32, 5          # channel_out == hidden_units[0] == 32, 5 classes
    C_out = H0

    key = jax.random.PRNGKey(0)
    ks = jax.random.split(key, 12)
    x = jax.random.normal(ks[0], (B, C_in, S), jnp.float32)
    labels = jax.random.randint(ks[1], (B,), 0, n_cls, dtype=jnp.int32)

    params = {
        "convs": [
            (0.1 * jax.random.normal(ks[2 + 2 * i], (C_out, C_in, fs), jnp.float32),
             0.1 * jax.random.normal(ks[3 + 2 * i], (C_out,), jnp.float32))
            for i, fs in enumerate(filter_hs)
        ],
        "h0_w": 0.1 * jax.random.normal(ks[8], (H0, 3 * H0), jnp.float32),
        "h0_b": 0.1 * jax.random.normal(ks[9], (H0,), jnp.float32),
        "cls_w": 0.1 * jax.random.normal(ks[10], (n_cls, H0), jnp.float32),
        "cls_b": 0.1 * jax.random.normal(ks[11], (n_cls,), jnp.float32),
    }

    loss, preds = textcnn_forward(x, params, labels, filter_hs=filter_hs)
    jax.block_until_ready((loss, preds))

    ref_loss, ref_preds = reference_forward(x, params, labels)
    assert jnp.isfinite(loss), "loss is not finite"
    # bf16 conv operands (f32 accumulation, per-tap K = C_in) -> tight but not exact.
    assert jnp.allclose(loss, ref_loss, atol=1e-2, rtol=1e-2), (loss, ref_loss)
    assert jnp.array_equal(preds, ref_preds), (preds, ref_preds)

    print("KERNEL_OK")
</pallas_src>

<mosaic_0001>
module attributes {stable_mosaic.version = 11 : i64} {
  func.func @_textcnn_kernel(%arg0: i32, %arg1: memref<8x18x4xbf16, #tpu.memory_space<vmem>>, %arg2: memref<5x4x128xbf16, #tpu.memory_space<vmem>>, %arg3: memref<14x128xf32, #tpu.memory_space<vmem>>, %arg4: memref<128x32xf32, #tpu.memory_space<vmem>>, %arg5: memref<1x32xf32, #tpu.memory_space<vmem>>, %arg6: memref<32x128xf32, #tpu.memory_space<vmem>>, %arg7: memref<1x128xf32, #tpu.memory_space<vmem>>, %arg8: memref<128x8xf32, #tpu.memory_space<vmem>>, %arg9: memref<1x8xf32, #tpu.memory_space<vmem>>, %arg10: memref<1x8xi32, #tpu.memory_space<vmem>>) attributes {dimension_semantics = [#tpu.dimension_semantics<parallel>], iteration_bounds = array<i64: 1>, scalar_prefetch = 0 : i64, scratch_operands = 0 : i64, tpu.core_type = #tpu.core_type<tc>, window_params = [{transform_indices = @transform_0, window_bounds = array<i64: 8, 18, 4>}, {pipeline_mode = #tpu.pipeline_mode<synchronous>, transform_indices = @transform_1, window_bounds = array<i64: 5, 4, 128>}, {pipeline_mode = #tpu.pipeline_mode<synchronous>, transform_indices = @transform_2, window_bounds = array<i64: 14, 128>}, {pipeline_mode = #tpu.pipeline_mode<synchronous>, transform_indices = @transform_3, window_bounds = array<i64: 128, 32>}, {pipeline_mode = #tpu.pipeline_mode<synchronous>, transform_indices = @transform_4, window_bounds = array<i64: 1, 32>}, {pipeline_mode = #tpu.pipeline_mode<synchronous>, transform_indices = @transform_5, window_bounds = array<i64: 32, 128>}, {pipeline_mode = #tpu.pipeline_mode<synchronous>, transform_indices = @transform_6, window_bounds = array<i64: 1, 128>}, {transform_indices = @transform_7, window_bounds = array<i64: 128, 8>}, {transform_indices = @transform_8, window_bounds = array<i64: 1, 8>}, {transform_indices = @transform_9, window_bounds = array<i64: 1, 8>}]} {
    %c0 = arith.constant 0 : index
    %c0_0 = arith.constant 0 : index
    %c0_1 = arith.constant 0 : index
    %0 = vector.load %arg1[%c0, %c0_0, %c0_1] : memref<8x18x4xbf16, #tpu.memory_space<vmem>>, vector<8x18x4xbf16>
    %c0_2 = arith.constant 0 : index
    %c0_3 = arith.constant 0 : index
    %1 = vector.load %arg3[%c0_2, %c0_3] : memref<14x128xf32, #tpu.memory_space<vmem>>, vector<14x128xf32>
    %2 = vector.extract_strided_slice %0 {offsets = [0, 0, 0], sizes = [1, 14, 4], strides = [1, 1, 1]} : vector<8x18x4xbf16> to vector<1x14x4xbf16>
    %3 = vector.shape_cast %2 : vector<1x14x4xbf16> to vector<14x4xbf16>
    %c0_4 = arith.constant 0 : index
    %c0_5 = arith.constant 0 : index
    %c0_6 = arith.constant 0 : index
    %4 = vector.load %arg2[%c0_4, %c0_5, %c0_6] : memref<5x4x128xbf16, #tpu.memory_space<vmem>>, vector<1x4x128xbf16>
    %5 = vector.shape_cast %4 : vector<1x4x128xbf16> to vector<4x128xbf16>
    %cst = arith.constant dense<0.000000e+00> : vector<14x128xf32>
    %6 = tpu.matmul %3, %5, %cst {dimension_numbers = #tpu.dot_dimension_numbers<[1], [0], [0], [1], [0, 0, 1, 1], [], []>} : vector<14x4xbf16>, vector<4x128xbf16>, vector<14x128xf32> -> vector<14x128xf32>
    %7 = vector.extract_strided_slice %0 {offsets = [0, 1, 0], sizes = [1, 14, 4], strides = [1, 1, 1]} : vector<8x18x4xbf16> to vector<1x14x4xbf16>
    %8 = vector.shape_cast %7 : vector<1x14x4xbf16> to vector<14x4xbf16>
    %c1 = arith.constant 1 : index
    %c0_7 = arith.constant 0 : index
    %c0_8 = arith.constant 0 : index
    %9 = vector.load %arg2[%c1, %c0_7, %c0_8] : memref<5x4x128xbf16, #tpu.memory_space<vmem>>, vector<1x4x128xbf16>
    %10 = vector.shape_cast %9 : vector<1x4x128xbf16> to vector<4x128xbf16>
    %cst_9 = arith.constant dense<0.000000e+00> : vector<14x128xf32>
    %11 = tpu.matmul %8, %10, %cst_9 {dimension_numbers = #tpu.dot_dimension_numbers<[1], [0], [0], [1], [0, 0, 1, 1], [], []>} : vector<14x4xbf16>, vector<4x128xbf16>, vector<14x128xf32> -> vector<14x128xf32>
    %12 = arith.addf %6, %11 : vector<14x128xf32>
    %13 = vector.extract_strided_slice %0 {offsets = [0, 2, 0], sizes = [1, 14, 4], strides = [1, 1, 1]} : vector<8x18x4xbf16> to vector<1x14x4xbf16>
    %14 = vector.shape_cast %13 : vector<1x14x4xbf16> to vector<14x4xbf16>
    %c2 = arith.constant 2 : index
    %c0_10 = arith.constant 0 : index
    %c0_11 = arith.constant 0 : index
    %15 = vector.load %arg2[%c2, %c0_10, %c0_11] : memref<5x4x128xbf16, #tpu.memory_space<vmem>>, vector<1x4x128xbf16>
    %16 = vector.shape_cast %15 : vector<1x4x128xbf16> to vector<4x128xbf16>
    %cst_12 = arith.constant dense<0.000000e+00> : vector<14x128xf32>
    %17 = tpu.matmul %14, %16, %cst_12 {dimension_numbers = #tpu.dot_dimension_numbers<[1], [0], [0], [1], [0, 0, 1, 1], [], []>} : vector<14x4xbf16>, vector<4x128xbf16>, vector<14x128xf32> -> vector<14x128xf32>
    %18 = arith.addf %12, %17 : vector<14x128xf32>
    %19 = vector.extract_strided_slice %0 {offsets = [0, 3, 0], sizes = [1, 14, 4], strides = [1, 1, 1]} : vector<8x18x4xbf16> to vector<1x14x4xbf16>
    %20 = vector.shape_cast %19 : vector<1x14x4xbf16> to vector<14x4xbf16>
    %c3 = arith.constant 3 : index
    %c0_13 = arith.constant 0 : index
    %c0_14 = arith.constant 0 : index
    %21 = vector.load %arg2[%c3, %c0_13, %c0_14] : memref<5x4x128xbf16, #tpu.memory_space<vmem>>, vector<1x4x128xbf16>
    %22 = vector.shape_cast %21 : vector<1x4x128xbf16> to vector<4x128xbf16>
    %cst_15 = arith.constant dense<0.000000e+00> : vector<14x128xf32>
    %23 = tpu.matmul %20, %22, %cst_15 {dimension_numbers = #tpu.dot_dimension_numbers<[1], [0], [0], [1], [0, 0, 1, 1], [], []>} : vector<14x4xbf16>, vector<4x128xbf16>, vector<14x128xf32> -> vector<14x128xf32>
    %24 = arith.addf %18, %23 : vector<14x128xf32>
    %25 = vector.extract_strided_slice %0 {offsets = [0, 4, 0], sizes = [1, 14, 4], strides = [1, 1, 1]} : vector<8x18x4xbf16> to vector<1x14x4xbf16>
    %26 = vector.shape_cast %25 : vector<1x14x4xbf16> to vector<14x4xbf16>
    %c4 = arith.constant 4 : index
    %c0_16 = arith.constant 0 : index
    %c0_17 = arith.constant 0 : index
    %27 = vector.load %arg2[%c4, %c0_16, %c0_17] : memref<5x4x128xbf16, #tpu.memory_space<vmem>>, vector<1x4x128xbf16>
    %28 = vector.shape_cast %27 : vector<1x4x128xbf16> to vector<4x128xbf16>
    %cst_18 = arith.constant dense<0.000000e+00> : vector<14x128xf32>
    %29 = tpu.matmul %26, %28, %cst_18 {dimension_numbers = #tpu.dot_dimension_numbers<[1], [0], [0], [1], [0, 0, 1, 1], [], []>} : vector<14x4xbf16>, vector<4x128xbf16>, vector<14x128xf32> -> vector<14x128xf32>
    %30 = arith.addf %24, %29 : vector<14x128xf32>
    %31 = arith.addf %30, %1 : vector<14x128xf32>
    %cst_19 = arith.constant 0.000000e+00 : f32
    %32 = vector.broadcast %cst_19 : f32 to vector<14x128xf32>
    %33 = arith.maximumf %31, %32 : vector<14x128xf32>
    %cst_20 = arith.constant dense<0xFF800000> : vector<128xf32>
    %34 = vector.multi_reduction <maximumf>, %33, %cst_20 [0] : vector<14x128xf32> to vector<128xf32>
    %35 = vector.shape_cast %34 : vector<128xf32> to vector<1x128xf32>
    %36 = vector.extract_strided_slice %0 {offsets = [1, 0, 0], sizes = [1, 14, 4], strides = [1, 1, 1]} : vector<8x18x4xbf16> to vector<1x14x4xbf16>
    %37 = vector.shape_cast %36 : vector<1x14x4xbf16> to vector<14x4xbf16>
    %c0_21 = arith.constant 0 : index
    %c0_22 = arith.constant 0 : index
    %c0_23 = arith.constant 0 : index
    %38 = vector.load %arg2[%c0_21, %c0_22, %c0_23] : memref<5x4x128xbf16, #tpu.memory_space<vmem>>, vector<1x4x128xbf16>
    %39 = vector.shape_cast %38 : vector<1x4x128xbf16> to vector<4x128xbf16>
    %cst_24 = arith.constant dense<0.000000e+00> : vector<14x128xf32>
    %40 = tpu.matmul %37, %39, %cst_24 {dimension_numbers = #tpu.dot_dimension_numbers<[1], [0], [0], [1], [0, 0, 1, 1], [], []>} : vector<14x4xbf16>, vector<4x128xbf16>, vector<14x128xf32> -> vector<14x128xf32>
    %41 = vector.extract_strided_slice %0 {offsets = [1, 1, 0], sizes = [1, 14, 4], strides = [1, 1, 1]} : vector<8x18x4xbf16> to vector<1x14x4xbf16>
    %42 = vector.shape_cast %41 : vector<1x14x4xbf16> to vector<14x4xbf16>
    %c1_25 = arith.constant 1 : index
    %c0_26 = arith.constant 0 : index
    %c0_27 = arith.constant 0 : index
    %43 = vector.load %arg2[%c1_25, %c0_26, %c0_27] : memref<5x4x128xbf16, #tpu.memory_space<vmem>>, vector<1x4x128xbf16>
    %44 = vector.shape_cast %43 : vector<1x4x128xbf16> to vector<4x128xbf16>
    %cst_28 = arith.constant dense<0.000000e+00> : vector<14x128xf32>
    %45 = tpu.matmul %42, %44, %cst_28 {dimension_numbers = #tpu.dot_dimension_numbers<[1], [0], [0], [1], [0, 0, 1, 1], [], []>} : vector<14x4xbf16>, vector<4x128xbf16>, vector<14x128xf32> -> vector<14x128xf32>
    %46 = arith.addf %40, %45 : vector<14x128xf32>
    %47 = vector.extract_strided_slice %0 {offsets = [1, 2, 0], sizes = [1, 14, 4], strides = [1, 1, 1]} : vector<8x18x4xbf16> to vector<1x14x4xbf16>
    %48 = vector.shape_cast %47 : vector<1x14x4xbf16> to vector<14x4xbf16>
    %c2_29 = arith.constant 2 : index
    %c0_30 = arith.constant 0 : index
    %c0_31 = arith.constant 0 : index
    %49 = vector.load %arg2[%c2_29, %c0_30, %c0_31] : memref<5x4x128xbf16, #tpu.memory_space<vmem>>, vector<1x4x128xbf16>
    %50 = vector.shape_cast %49 : vector<1x4x128xbf16> to vector<4x128xbf16>
    %cst_32 = arith.constant dense<0.000000e+00> : vector<14x128xf32>
    %51 = tpu.matmul %48, %50, %cst_32 {dimension_numbers = #tpu.dot_dimension_numbers<[1], [0], [0], [1], [0, 0, 1, 1], [], []>} : vector<14x4xbf16>, vector<4x128xbf16>, vector<14x128xf32> -> vector<14x128xf32>
    %52 = arith.addf %46, %51 : vector<14x128xf32>
    %53 = vector.extract_strided_slice %0 {offsets = [1, 3, 0], sizes = [1, 14, 4], strides = [1, 1, 1]} : vector<8x18x4xbf16> to vector<1x14x4xbf16>
    %54 = vector.shape_cast %53 : vector<1x14x4xbf16> to vector<14x4xbf16>
    %c3_33 = arith.constant 3 : index
    %c0_34 = arith.constant 0 : index
    %c0_35 = arith.constant 0 : index
    %55 = vector.load %arg2[%c3_33, %c0_34, %c0_35] : memref<5x4x128xbf16, #tpu.memory_space<vmem>>, vector<1x4x128xbf16>
    %56 = vector.shape_cast %55 : vector<1x4x128xbf16> to vector<4x128xbf16>
    %cst_36 = arith.constant dense<0.000000e+00> : vector<14x128xf32>
    %57 = tpu.matmul %54, %56, %cst_36 {dimension_numbers = #tpu.dot_dimension_numbers<[1], [0], [0], [1], [0, 0, 1, 1], [], []>} : vector<14x4xbf16>, vector<4x128xbf16>, vector<14x128xf32> -> vector<14x128xf32>
    %58 = arith.addf %52, %57 : vector<14x128xf32>
    %59 = vector.extract_strided_slice %0 {offsets = [1, 4, 0], sizes = [1, 14, 4], strides = [1, 1, 1]} : vector<8x18x4xbf16> to vector<1x14x4xbf16>
    %60 = vector.shape_cast %59 : vector<1x14x4xbf16> to vector<14x4xbf16>
    %c4_37 = arith.constant 4 : index
    %c0_38 = arith.constant 0 : index
    %c0_39 = arith.constant 0 : index
    %61 = vector.load %arg2[%c4_37, %c0_38, %c0_39] : memref<5x4x128xbf16, #tpu.memory_space<vmem>>, vector<1x4x128xbf16>
    %62 = vector.shape_cast %61 : vector<1x4x128xbf16> to vector<4x128xbf16>
    %cst_40 = arith.constant dense<0.000000e+00> : vector<14x128xf32>
    %63 = tpu.matmul %60, %62, %cst_40 {dimension_numbers = #tpu.dot_dimension_numbers<[1], [0], [0], [1], [0, 0, 1, 1], [], []>} : vector<14x4xbf16>, vector<4x128xbf16>, vector<14x128xf32> -> vector<14x128xf32>
    %64 = arith.addf %58, %63 : vector<14x128xf32>
    %65 = arith.addf %64, %1 : vector<14x128xf32>
    %cst_41 = arith.constant 0.000000e+00 : f32
    %66 = vector.broadcast %cst_41 : f32 to vector<14x128xf32>
    %67 = arith.maximumf %65, %66 : vector<14x128xf32>
    %cst_42 = arith.constant dense<0xFF800000> : vector<128xf32>
    %68 = vector.multi_reduction <maximumf>, %67, %cst_42 [0] : vector<14x128xf32> to vector<128xf32>
    %69 = vector.shape_cast %68 : vector<128xf32> to vector<1x128xf32>
    %70 = vector.extract_strided_slice %0 {offsets = [2, 0, 0], sizes = [1, 14, 4], strides = [1, 1, 1]} : vector<8x18x4xbf16> to vector<1x14x4xbf16>
    %71 = vector.shape_cast %70 : vector<1x14x4xbf16> to vector<14x4xbf16>
    %c0_43 = arith.constant 0 : index
    %c0_44 = arith.constant 0 : index
    %c0_45 = arith.constant 0 : index
    %72 = vector.load %arg2[%c0_43, %c0_44, %c0_45] : memref<5x4x128xbf16, #tpu.memory_space<vmem>>, vector<1x4x128xbf16>
    %73 = vector.shape_cast %72 : vector<1x4x128xbf16> to vector<4x128xbf16>
    %cst_46 = arith.constant dense<0.000000e+00> : vector<14x128xf32>
    %74 = tpu.matmul %71, %73, %cst_46 {dimension_numbers = #tpu.dot_dimension_numbers<[1], [0], [0], [1], [0, 0, 1, 1], [], []>} : vector<14x4xbf16>, vector<4x128xbf16>, vector<14x128xf32> -> vector<14x128xf32>
    %75 = vector.extract_strided_slice %0 {offsets = [2, 1, 0], sizes = [1, 14, 4], strides = [1, 1, 1]} : vector<8x18x4xbf16> to vector<1x14x4xbf16>
    %76 = vector.shape_cast %75 : vector<1x14x4xbf16> to vector<14x4xbf16>
    %c1_47 = arith.constant 1 : index
    %c0_48 = arith.constant 0 : index
    %c0_49 = arith.constant 0 : index
    %77 = vector.load %arg2[%c1_47, %c0_48, %c0_49] : memref<5x4x128xbf16, #tpu.memory_space<vmem>>, vector<1x4x128xbf16>
    %78 = vector.shape_cast %77 : vector<1x4x128xbf16> to vector<4x128xbf16>
    %cst_50 = arith.constant dense<0.000000e+00> : vector<14x128xf32>
    %79 = tpu.matmul %76, %78, %cst_50 {dimension_numbers = #tpu.dot_dimension_numbers<[1], [0], [0], [1], [0, 0, 1, 1], [], []>} : vector<14x4xbf16>, vector<4x128xbf16>, vector<14x128xf32> -> vector<14x128xf32>
    %80 = arith.addf %74, %79 : vector<14x128xf32>
    %81 = vector.extract_strided_slice %0 {offsets = [2, 2, 0], sizes = [1, 14, 4], strides = [1, 1, 1]} : vector<8x18x4xbf16> to vector<1x14x4xbf16>
    %82 = vector.shape_cast %81 : vector<1x14x4xbf16> to vector<14x4xbf16>
    %c2_51 = arith.constant 2 : index
    %c0_52 = arith.constant 0 : index
    %c0_53 = arith.constant 0 : index
    %83 = vector.load %arg2[%c2_51, %c0_52, %c0_53] : memref<5x4x128xbf16, #tpu.memory_space<vmem>>, vector<1x4x128xbf16>
    %84 = vector.shape_cast %83 : vector<1x4x128xbf16> to vector<4x128xbf16>
    %cst_54 = arith.constant dense<0.000000e+00> : vector<14x128xf32>
    %85 = tpu.matmul %82, %84, %cst_54 {dimension_numbers = #tpu.dot_dimension_numbers<[1], [0], [0], [1], [0, 0, 1, 1], [], []>} : vector<14x4xbf16>, vector<4x128xbf16>, vector<14x128xf32> -> vector<14x128xf32>
    %86 = arith.addf %80, %85 : vector<14x128xf32>
    %87 = vector.extract_strided_slice %0 {offsets = [2, 3, 0], sizes = [1, 14, 4], strides = [1, 1, 1]} : vector<8x18x4xbf16> to vector<1x14x4xbf16>
    %88 = vector.shape_cast %87 : vector<1x14x4xbf16> to vector<14x4xbf16>
    %c3_55 = arith.constant 3 : index
    %c0_56 = arith.constant 0 : index
    %c0_57 = arith.constant 0 : index
    %89 = vector.load %arg2[%c3_55, %c0_56, %c0_57] : memref<5x4x128xbf16, #tpu.memory_space<vmem>>, vector<1x4x128xbf16>
    %90 = vector.shape_cast %89 : vector<1x4x128xbf16> to vector<4x128xbf16>
    %cst_58 = arith.constant dense<0.000000e+00> : vector<14x128xf32>
    %91 = tpu.matmul %88, %90, %cst_58 {dimension_numbers = #tpu.dot_dimension_numbers<[1], [0], [0], [1], [0, 0, 1, 1], [], []>} : vector<14x4xbf16>, vector<4x128xbf16>, vector<14x128xf32> -> vector<14x128xf32>
    %92 = arith.addf %86, %91 : vector<14x128xf32>
    %93 = vector.extract_strided_slice %0 {offsets = [2, 4, 0], sizes = [1, 14, 4], strides = [1, 1, 1]} : vector<8x18x4xbf16> to vector<1x14x4xbf16>
    %94 = vector.shape_cast %93 : vector<1x14x4xbf16> to vector<14x4xbf16>
    %c4_59 = arith.constant 4 : index
    %c0_60 = arith.constant 0 : index
    %c0_61 = arith.constant 0 : index
    %95 = vector.load %arg2[%c4_59, %c0_60, %c0_61] : memref<5x4x128xbf16, #tpu.memory_space<vmem>>, vector<1x4x128xbf16>
    %96 = vector.shape_cast %95 : vector<1x4x128xbf16> to vector<4x128xbf16>
    %cst_62 = arith.constant dense<0.000000e+00> : vector<14x128xf32>
    %97 = tpu.matmul %94, %96, %cst_62 {dimension_numbers = #tpu.dot_dimension_numbers<[1], [0], [0], [1], [0, 0, 1, 1], [], []>} : vector<14x4xbf16>, vector<4x128xbf16>, vector<14x128xf32> -> vector<14x128xf32>
    %98 = arith.addf %92, %97 : vector<14x128xf32>
    %99 = arith.addf %98, %1 : vector<14x128xf32>
    %cst_63 = arith.constant 0.000000e+00 : f32
    %100 = vector.broadcast %cst_63 : f32 to vector<14x128xf32>
    %101 = arith.maximumf %99, %100 : vector<14x128xf32>
    %cst_64 = arith.constant dense<0xFF800000> : vector<128xf32>
    %102 = vector.multi_reduction <maximumf>, %101, %cst_64 [0] : vector<14x128xf32> to vector<128xf32>
    %103 = vector.shape_cast %102 : vector<128xf32> to vector<1x128xf32>
    %104 = vector.extract_strided_slice %0 {offsets = [3, 0, 0], sizes = [1, 14, 4], strides = [1, 1, 1]} : vector<8x18x4xbf16> to vector<1x14x4xbf16>
    %105 = vector.shape_cast %104 : vector<1x14x4xbf16> to vector<14x4xbf16>
    %c0_65 = arith.constant 0 : index
    %c0_66 = arith.constant 0 : index
    %c0_67 = arith.constant 0 : index
    %106 = vector.load %arg2[%c0_65, %c0_66, %c0_67] : memref<5x4x128xbf16, #tpu.memory_space<vmem>>, vector<1x4x128xbf16>
    %107 = vector.shape_cast %106 : vector<1x4x128xbf16> to vector<4x128xbf16>
    %cst_68 = arith.constant dense<0.000000e+00> : vector<14x128xf32>
    %108 = tpu.matmul %105, %107, %cst_68 {dimension_numbers = #tpu.dot_dimension_numbers<[1], [0], [0], [1], [0, 0, 1, 1], [], []>} : vector<14x4xbf16>, vector<4x128xbf16>, vector<14x128xf32> -> vector<14x128xf32>
    %109 = vector.extract_strided_slice %0 {offsets = [3, 1, 0], sizes = [1, 14, 4], strides = [1, 1, 1]} : vector<8x18x4xbf16> to vector<1x14x4xbf16>
    %110 = vector.shape_cast %109 : vector<1x14x4xbf16> to vector<14x4xbf16>
    %c1_69 = arith.constant 1 : index
    %c0_70 = arith.constant 0 : index
    %c0_71 = arith.constant 0 : index
    %111 = vector.load %arg2[%c1_69, %c0_70, %c0_71] : memref<5x4x128xbf16, #tpu.memory_space<vmem>>, vector<1x4x128xbf16>
    %112 = vector.shape_cast %111 : vector<1x4x128xbf16> to vector<4x128xbf16>
    %cst_72 = arith.constant dense<0.000000e+00> : vector<14x128xf32>
    %113 = tpu.matmul %110, %112, %cst_72 {dimension_numbers = #tpu.dot_dimension_numbers<[1], [0], [0], [1], [0, 0, 1, 1], [], []>} : vector<14x4xbf16>, vector<4x128xbf16>, vector<14x128xf32> -> vector<14x128xf32>
    %114 = arith.addf %108, %113 : vector<14x128xf32>
    %115 = vector.extract_strided_slice %0 {offsets = [3, 2, 0], sizes = [1, 14, 4], strides = [1, 1, 1]} : vector<8x18x4xbf16> to vector<1x14x4xbf16>
    %116 = vector.shape_cast %115 : vector<1x14x4xbf16> to vector<14x4xbf16>
    %c2_73 = arith.constant 2 : index
    %c0_74 = arith.constant 0 : index
    %c0_75 = arith.constant 0 : index
    %117 = vector.load %arg2[%c2_73, %c0_74, %c0_75] : memref<5x4x128xbf16, #tpu.memory_space<vmem>>, vector<1x4x128xbf16>
    %118 = vector.shape_cast %117 : vector<1x4x128xbf16> to vector<4x128xbf16>
    %cst_76 = arith.constant dense<0.000000e+00> : vector<14x128xf32>
    %119 = tpu.matmul %116, %118, %cst_76 {dimension_numbers = #tpu.dot_dimension_numbers<[1], [0], [0], [1], [0, 0, 1, 1], [], []>} : vector<14x4xbf16>, vector<4x128xbf16>, vector<14x128xf32> -> vector<14x128xf32>
    %120 = arith.addf %114, %119 : vector<14x128xf32>
    %121 = vector.extract_strided_slice %0 {offsets = [3, 3, 0], sizes = [1, 14, 4], strides = [1, 1, 1]} : vector<8x18x4xbf16> to vector<1x14x4xbf16>
    %122 = vector.shape_cast %121 : vector<1x14x4xbf16> to vector<14x4xbf16>
    %c3_77 = arith.constant 3 : index
    %c0_78 = arith.constant 0 : index
    %c0_79 = arith.constant 0 : index
    %123 = vector.load %arg2[%c3_77, %c0_78, %c0_79] : memref<5x4x128xbf16, #tpu.memory_space<vmem>>, vector<1x4x128xbf16>
    %124 = vector.shape_cast %123 : vector<1x4x128xbf16> to vector<4x128xbf16>
    %cst_80 = arith.constant dense<0.000000e+00> : vector<14x128xf32>
    %125 = tpu.matmul %122, %124, %cst_80 {dimension_numbers = #tpu.dot_dimension_numbers<[1], [0], [0], [1], [0, 0, 1, 1], [], []>} : vector<14x4xbf16>, vector<4x128xbf16>, vector<14x128xf32> -> vector<14x128xf32>
    %126 = arith.addf %120, %125 : vector<14x128xf32>
    %127 = vector.extract_strided_slice %0 {offsets = [3, 4, 0], sizes = [1, 14, 4], strides = [1, 1, 1]} : vector<8x18x4xbf16> to vector<1x14x4xbf16>
    %128 = vector.shape_cast %127 : vector<1x14x4xbf16> to vector<14x4xbf16>
    %c4_81 = arith.constant 4 : index
    %c0_82 = arith.constant 0 : index
    %c0_83 = arith.constant 0 : index
    %129 = vector.load %arg2[%c4_81, %c0_82, %c0_83] : memref<5x4x128xbf16, #tpu.memory_space<vmem>>, vector<1x4x128xbf16>
    %130 = vector.shape_cast %129 : vector<1x4x128xbf16> to vector<4x128xbf16>
    %cst_84 = arith.constant dense<0.000000e+00> : vector<14x128xf32>
    %131 = tpu.matmul %128, %130, %cst_84 {dimension_numbers = #tpu.dot_dimension_numbers<[1], [0], [0], [1], [0, 0, 1, 1], [], []>} : vector<14x4xbf16>, vector<4x128xbf16>, vector<14x128xf32> -> vector<14x128xf32>
    %132 = arith.addf %126, %131 : vector<14x128xf32>
    %133 = arith.addf %132, %1 : vector<14x128xf32>
    %cst_85 = arith.constant 0.000000e+00 : f32
    %134 = vector.broadcast %cst_85 : f32 to vector<14x128xf32>
    %135 = arith.maximumf %133, %134 : vector<14x128xf32>
    %cst_86 = arith.constant dense<0xFF800000> : vector<128xf32>
    %136 = vector.multi_reduction <maximumf>, %135, %cst_86 [0] : vector<14x128xf32> to vector<128xf32>
    %137 = vector.shape_cast %136 : vector<128xf32> to vector<1x128xf32>
    %138 = vector.extract_strided_slice %0 {offsets = [4, 0, 0], sizes = [1, 14, 4], strides = [1, 1, 1]} : vector<8x18x4xbf16> to vector<1x14x4xbf16>
    %139 = vector.shape_cast %138 : vector<1x14x4xbf16> to vector<14x4xbf16>
    %c0_87 = arith.constant 0 : index
    %c0_88 = arith.constant 0 : index
    %c0_89 = arith.constant 0 : index
    %140 = vector.load %arg2[%c0_87, %c0_88, %c0_89] : memref<5x4x128xbf16, #tpu.memory_space<vmem>>, vector<1x4x128xbf16>
    %141 = vector.shape_cast %140 : vector<1x4x128xbf16> to vector<4x128xbf16>
    %cst_90 = arith.constant dense<0.000000e+00> : vector<14x128xf32>
    %142 = tpu.matmul %139, %141, %cst_90 {dimension_numbers = #tpu.dot_dimension_numbers<[1], [0], [0], [1], [0, 0, 1, 1], [], []>} : vector<14x4xbf16>, vector<4x128xbf16>, vector<14x128xf32> -> vector<14x128xf32>
    %143 = vector.extract_strided_slice %0 {offsets = [4, 1, 0], sizes = [1, 14, 4], strides = [1, 1, 1]} : vector<8x18x4xbf16> to vector<1x14x4xbf16>
    %144 = vector.shape_cast %143 : vector<1x14x4xbf16> to vector<14x4xbf16>
    %c1_91 = arith.constant 1 : index
    %c0_92 = arith.constant 0 : index
    %c0_93 = arith.constant 0 : index
    %145 = vector.load %arg2[%c1_91, %c0_92, %c0_93] : memref<5x4x128xbf16, #tpu.memory_space<vmem>>, vector<1x4x128xbf16>
    %146 = vector.shape_cast %145 : vector<1x4x128xbf16> to vector<4x128xbf16>
    %cst_94 = arith.constant dense<0.000000e+00> : vector<14x128xf32>
    %147 = tpu.matmul %144, %146, %cst_94 {dimension_numbers = #tpu.dot_dimension_numbers<[1], [0], [0], [1], [0, 0, 1, 1], [], []>} : vector<14x4xbf16>, vector<4x128xbf16>, vector<14x128xf32> -> vector<14x128xf32>
    %148 = arith.addf %142, %147 : vector<14x128xf32>
    %149 = vector.extract_strided_slice %0 {offsets = [4, 2, 0], sizes = [1, 14, 4], strides = [1, 1, 1]} : vector<8x18x4xbf16> to vector<1x14x4xbf16>
    %150 = vector.shape_cast %149 : vector<1x14x4xbf16> to vector<14x4xbf16>
    %c2_95 = arith.constant 2 : index
    %c0_96 = arith.constant 0 : index
    %c0_97 = arith.constant 0 : index
    %151 = vector.load %arg2[%c2_95, %c0_96, %c0_97] : memref<5x4x128xbf16, #tpu.memory_space<vmem>>, vector<1x4x128xbf16>
    %152 = vector.shape_cast %151 : vector<1x4x128xbf16> to vector<4x128xbf16>
    %cst_98 = arith.constant dense<0.000000e+00> : vector<14x128xf32>
    %153 = tpu.matmul %150, %152, %cst_98 {dimension_numbers = #tpu.dot_dimension_numbers<[1], [0], [0], [1], [0, 0, 1, 1], [], []>} : vector<14x4xbf16>, vector<4x128xbf16>, vector<14x128xf32> -> vector<14x128xf32>
    %154 = arith.addf %148, %153 : vector<14x128xf32>
    %155 = vector.extract_strided_slice %0 {offsets = [4, 3, 0], sizes = [1, 14, 4], strides = [1, 1, 1]} : vector<8x18x4xbf16> to vector<1x14x4xbf16>
    %156 = vector.shape_cast %155 : vector<1x14x4xbf16> to vector<14x4xbf16>
    %c3_99 = arith.constant 3 : index
    %c0_100 = arith.constant 0 : index
    %c0_101 = arith.constant 0 : index
    %157 = vector.load %arg2[%c3_99, %c0_100, %c0_101] : memref<5x4x128xbf16, #tpu.memory_space<vmem>>, vector<1x4x128xbf16>
    %158 = vector.shape_cast %157 : vector<1x4x128xbf16> to vector<4x128xbf16>
    %cst_102 = arith.constant dense<0.000000e+00> : vector<14x128xf32>
    %159 = tpu.matmul %156, %158, %cst_102 {dimension_numbers = #tpu.dot_dimension_numbers<[1], [0], [0], [1], [0, 0, 1, 1], [], []>} : vector<14x4xbf16>, vector<4x128xbf16>, vector<14x128xf32> -> vector<14x128xf32>
    %160 = arith.addf %154, %159 : vector<14x128xf32>
    %161 = vector.extract_strided_slice %0 {offsets = [4, 4, 0], sizes = [1, 14, 4], strides = [1, 1, 1]} : vector<8x18x4xbf16> to vector<1x14x4xbf16>
    %162 = vector.shape_cast %161 : vector<1x14x4xbf16> to vector<14x4xbf16>
    %c4_103 = arith.constant 4 : index
    %c0_104 = arith.constant 0 : index
    %c0_105 = arith.constant 0 : index
    %163 = vector.load %arg2[%c4_103, %c0_104, %c0_105] : memref<5x4x128xbf16, #tpu.memory_space<vmem>>, vector<1x4x128xbf16>
    %164 = vector.shape_cast %163 : vector<1x4x128xbf16> to vector<4x128xbf16>
    %cst_106 = arith.constant dense<0.000000e+00> : vector<14x128xf32>
    %165 = tpu.matmul %162, %164, %cst_106 {dimension_numbers = #tpu.dot_dimension_numbers<[1], [0], [0], [1], [0, 0, 1, 1], [], []>} : vector<14x4xbf16>, vector<4x128xbf16>, vector<14x128xf32> -> vector<14x128xf32>
    %166 = arith.addf %160, %165 : vector<14x128xf32>
    %167 = arith.addf %166, %1 : vector<14x128xf32>
    %cst_107 = arith.constant 0.000000e+00 : f32
    %168 = vector.broadcast %cst_107 : f32 to vector<14x128xf32>
    %169 = arith.maximumf %167, %168 : vector<14x128xf32>
    %cst_108 = arith.constant dense<0xFF800000> : vector<128xf32>
    %170 = vector.multi_reduction <maximumf>, %169, %cst_108 [0] : vector<14x128xf32> to vector<128xf32>
    %171 = vector.shape_cast %170 : vector<128xf32> to vector<1x128xf32>
    %172 = vector.extract_strided_slice %0 {offsets = [5, 0, 0], sizes = [1, 14, 4], strides = [1, 1, 1]} : vector<8x18x4xbf16> to vector<1x14x4xbf16>
    %173 = vector.shape_cast %172 : vector<1x14x4xbf16> to vector<14x4xbf16>
    %c0_109 = arith.constant 0 : index
    %c0_110 = arith.constant 0 : index
    %c0_111 = arith.constant 0 : index
    %174 = vector.load %arg2[%c0_109, %c0_110, %c0_111] : memref<5x4x128xbf16, #tpu.memory_space<vmem>>, vector<1x4x128xbf16>
    %175 = vector.shape_cast %174 : vector<1x4x128xbf16> to vector<4x128xbf16>
    %cst_112 = arith.constant dense<0.000000e+00> : vector<14x128xf32>
    %176 = tpu.matmul %173, %175, %cst_112 {dimension_numbers = #tpu.dot_dimension_numbers<[1], [0], [0], [1], [0, 0, 1, 1], [], []>} : vector<14x4xbf16>, vector<4x128xbf16>, vector<14x128xf32> -> vector<14x128xf32>
    %177 = vector.extract_strided_slice %0 {offsets = [5, 1, 0], sizes = [1, 14, 4], strides = [1, 1, 1]} : vector<8x18x4xbf16> to vector<1x14x4xbf16>
    %178 = vector.shape_cast %177 : vector<1x14x4xbf16> to vector<14x4xbf16>
    %c1_113 = arith.constant 1 : index
    %c0_114 = arith.constant 0 : index
    %c0_115 = arith.constant 0 : index
    %179 = vector.load %arg2[%c1_113, %c0_114, %c0_115] : memref<5x4x128xbf16, #tpu.memory_space<vmem>>, vector<1x4x128xbf16>
    %180 = vector.shape_cast %179 : vector<1x4x128xbf16> to vector<4x128xbf16>
    %cst_116 = arith.constant dense<0.000000e+00> : vector<14x128xf32>
    %181 = tpu.matmul %178, %180, %cst_116 {dimension_numbers = #tpu.dot_dimension_numbers<[1], [0], [0], [1], [0, 0, 1, 1], [], []>} : vector<14x4xbf16>, vector<4x128xbf16>, vector<14x128xf32> -> vector<14x128xf32>
    %182 = arith.addf %176, %181 : vector<14x128xf32>
    %183 = vector.extract_strided_slice %0 {offsets = [5, 2, 0], sizes = [1, 14, 4], strides = [1, 1, 1]} : vector<8x18x4xbf16> to vector<1x14x4xbf16>
    %184 = vector.shape_cast %183 : vector<1x14x4xbf16> to vector<14x4xbf16>
    %c2_117 = arith.constant 2 : index
    %c0_118 = arith.constant 0 : index
    %c0_119 = arith.constant 0 : index
    %185 = vector.load %arg2[%c2_117, %c0_118, %c0_119] : memref<5x4x128xbf16, #tpu.memory_space<vmem>>, vector<1x4x128xbf16>
    %186 = vector.shape_cast %185 : vector<1x4x128xbf16> to vector<4x128xbf16>
    %cst_120 = arith.constant dense<0.000000e+00> : vector<14x128xf32>
    %187 = tpu.matmul %184, %186, %cst_120 {dimension_numbers = #tpu.dot_dimension_numbers<[1], [0], [0], [1], [0, 0, 1, 1], [], []>} : vector<14x4xbf16>, vector<4x128xbf16>, vector<14x128xf32> -> vector<14x128xf32>
    %188 = arith.addf %182, %187 : vector<14x128xf32>
    %189 = vector.extract_strided_slice %0 {offsets = [5, 3, 0], sizes = [1, 14, 4], strides = [1, 1, 1]} : vector<8x18x4xbf16> to vector<1x14x4xbf16>
    %190 = vector.shape_cast %189 : vector<1x14x4xbf16> to vector<14x4xbf16>
    %c3_121 = arith.constant 3 : index
    %c0_122 = arith.constant 0 : index
    %c0_123 = arith.constant 0 : index
    %191 = vector.load %arg2[%c3_121, %c0_122, %c0_123] : memref<5x4x128xbf16, #tpu.memory_space<vmem>>, vector<1x4x128xbf16>
    %192 = vector.shape_cast %191 : vector<1x4x128xbf16> to vector<4x128xbf16>
    %cst_124 = arith.constant dense<0.000000e+00> : vector<14x128xf32>
    %193 = tpu.matmul %190, %192, %cst_124 {dimension_numbers = #tpu.dot_dimension_numbers<[1], [0], [0], [1], [0, 0, 1, 1], [], []>} : vector<14x4xbf16>, vector<4x128xbf16>, vector<14x128xf32> -> vector<14x128xf32>
    %194 = arith.addf %188, %193 : vector<14x128xf32>
    %195 = vector.extract_strided_slice %0 {offsets = [5, 4, 0], sizes = [1, 14, 4], strides = [1, 1, 1]} : vector<8x18x4xbf16> to vector<1x14x4xbf16>
    %196 = vector.shape_cast %195 : vector<1x14x4xbf16> to vector<14x4xbf16>
    %c4_125 = arith.constant 4 : index
    %c0_126 = arith.constant 0 : index
    %c0_127 = arith.constant 0 : index
    %197 = vector.load %arg2[%c4_125, %c0_126, %c0_127] : memref<5x4x128xbf16, #tpu.memory_space<vmem>>, vector<1x4x128xbf16>
    %198 = vector.shape_cast %197 : vector<1x4x128xbf16> to vector<4x128xbf16>
    %cst_128 = arith.constant dense<0.000000e+00> : vector<14x128xf32>
    %199 = tpu.matmul %196, %198, %cst_128 {dimension_numbers = #tpu.dot_dimension_numbers<[1], [0], [0], [1], [0, 0, 1, 1], [], []>} : vector<14x4xbf16>, vector<4x128xbf16>, vector<14x128xf32> -> vector<14x128xf32>
    %200 = arith.addf %194, %199 : vector<14x128xf32>
    %201 = arith.addf %200, %1 : vector<14x128xf32>
    %cst_129 = arith.constant 0.000000e+00 : f32
    %202 = vector.broadcast %cst_129 : f32 to vector<14x128xf32>
    %203 = arith.maximumf %201, %202 : vector<14x128xf32>
    %cst_130 = arith.constant dense<0xFF800000> : vector<128xf32>
    %204 = vector.multi_reduction <maximumf>, %203, %cst_130 [0] : vector<14x128xf32> to vector<128xf32>
    %205 = vector.shape_cast %204 : vector<128xf32> to vector<1x128xf32>
    %206 = vector.extract_strided_slice %0 {offsets = [6, 0, 0], sizes = [1, 14, 4], strides = [1, 1, 1]} : vector<8x18x4xbf16> to vector<1x14x4xbf16>
    %207 = vector.shape_cast %206 : vector<1x14x4xbf16> to vector<14x4xbf16>
    %c0_131 = arith.constant 0 : index
    %c0_132 = arith.constant 0 : index
    %c0_133 = arith.constant 0 : index
    %208 = vector.load %arg2[%c0_131, %c0_132, %c0_133] : memref<5x4x128xbf16, #tpu.memory_space<vmem>>, vector<1x4x128xbf16>
    %209 = vector.shape_cast %208 : vector<1x4x128xbf16> to vector<4x128xbf16>
    %cst_134 = arith.constant dense<0.000000e+00> : vector<14x128xf32>
    %210 = tpu.matmul %207, %209, %cst_134 {dimension_numbers = #tpu.dot_dimension_numbers<[1], [0], [0], [1], [0, 0, 1, 1], [], []>} : vector<14x4xbf16>, vector<4x128xbf16>, vector<14x128xf32> -> vector<14x128xf32>
    %211 = vector.extract_strided_slice %0 {offsets = [6, 1, 0], sizes = [1, 14, 4], strides = [1, 1, 1]} : vector<8x18x4xbf16> to vector<1x14x4xbf16>
    %212 = vector.shape_cast %211 : vector<1x14x4xbf16> to vector<14x4xbf16>
    %c1_135 = arith.constant 1 : index
    %c0_136 = arith.constant 0 : index
    %c0_137 = arith.constant 0 : index
    %213 = vector.load %arg2[%c1_135, %c0_136, %c0_137] : memref<5x4x128xbf16, #tpu.memory_space<vmem>>, vector<1x4x128xbf16>
    %214 = vector.shape_cast %213 : vector<1x4x128xbf16> to vector<4x128xbf16>
    %cst_138 = arith.constant dense<0.000000e+00> : vector<14x128xf32>
    %215 = tpu.matmul %212, %214, %cst_138 {dimension_numbers = #tpu.dot_dimension_numbers<[1], [0], [0], [1], [0, 0, 1, 1], [], []>} : vector<14x4xbf16>, vector<4x128xbf16>, vector<14x128xf32> -> vector<14x128xf32>
    %216 = arith.addf %210, %215 : vector<14x128xf32>
    %217 = vector.extract_strided_slice %0 {offsets = [6, 2, 0], sizes = [1, 14, 4], strides = [1, 1, 1]} : vector<8x18x4xbf16> to vector<1x14x4xbf16>
    %218 = vector.shape_cast %217 : vector<1x14x4xbf16> to vector<14x4xbf16>
    %c2_139 = arith.constant 2 : index
    %c0_140 = arith.constant 0 : index
    %c0_141 = arith.constant 0 : index
    %219 = vector.load %arg2[%c2_139, %c0_140, %c0_141] : memref<5x4x128xbf16, #tpu.memory_space<vmem>>, vector<1x4x128xbf16>
    %220 = vector.shape_cast %219 : vector<1x4x128xbf16> to vector<4x128xbf16>
    %cst_142 = arith.constant dense<0.000000e+00> : vector<14x128xf32>
    %221 = tpu.matmul %218, %220, %cst_142 {dimension_numbers = #tpu.dot_dimension_numbers<[1], [0], [0], [1], [0, 0, 1, 1], [], []>} : vector<14x4xbf16>, vector<4x128xbf16>, vector<14x128xf32> -> vector<14x128xf32>
    %222 = arith.addf %216, %221 : vector<14x128xf32>
    %223 = vector.extract_strided_slice %0 {offsets = [6, 3, 0], sizes = [1, 14, 4], strides = [1, 1, 1]} : vector<8x18x4xbf16> to vector<1x14x4xbf16>
    %224 = vector.shape_cast %223 : vector<1x14x4xbf16> to vector<14x4xbf16>
    %c3_143 = arith.constant 3 : index
    %c0_144 = arith.constant 0 : index
    %c0_145 = arith.constant 0 : index
    %225 = vector.load %arg2[%c3_143, %c0_144, %c0_145] : memref<5x4x128xbf16, #tpu.memory_space<vmem>>, vector<1x4x128xbf16>
    %226 = vector.shape_cast %225 : vector<1x4x128xbf16> to vector<4x128xbf16>
    %cst_146 = arith.constant dense<0.000000e+00> : vector<14x128xf32>
    %227 = tpu.matmul %224, %226, %cst_146 {dimension_numbers = #tpu.dot_dimension_numbers<[1], [0], [0], [1], [0, 0, 1, 1], [], []>} : vector<14x4xbf16>, vector<4x128xbf16>, vector<14x128xf32> -> vector<14x128xf32>
    %228 = arith.addf %222, %227 : vector<14x128xf32>
    %229 = vector.extract_strided_slice %0 {offsets = [6, 4, 0], sizes = [1, 14, 4], strides = [1, 1, 1]} : vector<8x18x4xbf16> to vector<1x14x4xbf16>
    %230 = vector.shape_cast %229 : vector<1x14x4xbf16> to vector<14x4xbf16>
    %c4_147 = arith.constant 4 : index
    %c0_148 = arith.constant 0 : index
    %c0_149 = arith.constant 0 : index
    %231 = vector.load %arg2[%c4_147, %c0_148, %c0_149] : memref<5x4x128xbf16, #tpu.memory_space<vmem>>, vector<1x4x128xbf16>
    %232 = vector.shape_cast %231 : vector<1x4x128xbf16> to vector<4x128xbf16>
    %cst_150 = arith.constant dense<0.000000e+00> : vector<14x128xf32>
    %233 = tpu.matmul %230, %232, %cst_150 {dimension_numbers = #tpu.dot_dimension_numbers<[1], [0], [0], [1], [0, 0, 1, 1], [], []>} : vector<14x4xbf16>, vector<4x128xbf16>, vector<14x128xf32> -> vector<14x128xf32>
    %234 = arith.addf %228, %233 : vector<14x128xf32>
    %235 = arith.addf %234, %1 : vector<14x128xf32>
    %cst_151 = arith.constant 0.000000e+00 : f32
    %236 = vector.broadcast %cst_151 : f32 to vector<14x128xf32>
    %237 = arith.maximumf %235, %236 : vector<14x128xf32>
    %cst_152 = arith.constant dense<0xFF800000> : vector<128xf32>
    %238 = vector.multi_reduction <maximumf>, %237, %cst_152 [0] : vector<14x128xf32> to vector<128xf32>
    %239 = vector.shape_cast %238 : vector<128xf32> to vector<1x128xf32>
    %240 = vector.extract_strided_slice %0 {offsets = [7, 0, 0], sizes = [1, 14, 4], strides = [1, 1, 1]} : vector<8x18x4xbf16> to vector<1x14x4xbf16>
    %241 = vector.shape_cast %240 : vector<1x14x4xbf16> to vector<14x4xbf16>
    %c0_153 = arith.constant 0 : index
    %c0_154 = arith.constant 0 : index
    %c0_155 = arith.constant 0 : index
    %242 = vector.load %arg2[%c0_153, %c0_154, %c0_155] : memref<5x4x128xbf16, #tpu.memory_space<vmem>>, vector<1x4x128xbf16>
    %243 = vector.shape_cast %242 : vector<1x4x128xbf16> to vector<4x128xbf16>
    %cst_156 = arith.constant dense<0.000000e+00> : vector<14x128xf32>
    %244 = tpu.matmul %241, %243, %cst_156 {dimension_numbers = #tpu.dot_dimension_numbers<[1], [0], [0], [1], [0, 0, 1, 1], [], []>} : vector<14x4xbf16>, vector<4x128xbf16>, vector<14x128xf32> -> vector<14x128xf32>
    %245 = vector.extract_strided_slice %0 {offsets = [7, 1, 0], sizes = [1, 14, 4], strides = [1, 1, 1]} : vector<8x18x4xbf16> to vector<1x14x4xbf16>
    %246 = vector.shape_cast %245 : vector<1x14x4xbf16> to vector<14x4xbf16>
    %c1_157 = arith.constant 1 : index
    %c0_158 = arith.constant 0 : index
    %c0_159 = arith.constant 0 : index
    %247 = vector.load %arg2[%c1_157, %c0_158, %c0_159] : memref<5x4x128xbf16, #tpu.memory_space<vmem>>, vector<1x4x128xbf16>
    %248 = vector.shape_cast %247 : vector<1x4x128xbf16> to vector<4x128xbf16>
    %cst_160 = arith.constant dense<0.000000e+00> : vector<14x128xf32>
    %249 = tpu.matmul %246, %248, %cst_160 {dimension_numbers = #tpu.dot_dimension_numbers<[1], [0], [0], [1], [0, 0, 1, 1], [], []>} : vector<14x4xbf16>, vector<4x128xbf16>, vector<14x128xf32> -> vector<14x128xf32>
    %250 = arith.addf %244, %249 : vector<14x128xf32>
    %251 = vector.extract_strided_slice %0 {offsets = [7, 2, 0], sizes = [1, 14, 4], strides = [1, 1, 1]} : vector<8x18x4xbf16> to vector<1x14x4xbf16>
    %252 = vector.shape_cast %251 : vector<1x14x4xbf16> to vector<14x4xbf16>
    %c2_161 = arith.constant 2 : index
    %c0_162 = arith.constant 0 : index
    %c0_163 = arith.constant 0 : index
    %253 = vector.load %arg2[%c2_161, %c0_162, %c0_163] : memref<5x4x128xbf16, #tpu.memory_space<vmem>>, vector<1x4x128xbf16>
    %254 = vector.shape_cast %253 : vector<1x4x128xbf16> to vector<4x128xbf16>
    %cst_164 = arith.constant dense<0.000000e+00> : vector<14x128xf32>
    %255 = tpu.matmul %252, %254, %cst_164 {dimension_numbers = #tpu.dot_dimension_numbers<[1], [0], [0], [1], [0, 0, 1, 1], [], []>} : vector<14x4xbf16>, vector<4x128xbf16>, vector<14x128xf32> -> vector<14x128xf32>
    %256 = arith.addf %250, %255 : vector<14x128xf32>
    %257 = vector.extract_strided_slice %0 {offsets = [7, 3, 0], sizes = [1, 14, 4], strides = [1, 1, 1]} : vector<8x18x4xbf16> to vector<1x14x4xbf16>
    %258 = vector.shape_cast %257 : vector<1x14x4xbf16> to vector<14x4xbf16>
    %c3_165 = arith.constant 3 : index
    %c0_166 = arith.constant 0 : index
    %c0_167 = arith.constant 0 : index
    %259 = vector.load %arg2[%c3_165, %c0_166, %c0_167] : memref<5x4x128xbf16, #tpu.memory_space<vmem>>, vector<1x4x128xbf16>
    %260 = vector.shape_cast %259 : vector<1x4x128xbf16> to vector<4x128xbf16>
    %cst_168 = arith.constant dense<0.000000e+00> : vector<14x128xf32>
    %261 = tpu.matmul %258, %260, %cst_168 {dimension_numbers = #tpu.dot_dimension_numbers<[1], [0], [0], [1], [0, 0, 1, 1], [], []>} : vector<14x4xbf16>, vector<4x128xbf16>, vector<14x128xf32> -> vector<14x128xf32>
    %262 = arith.addf %256, %261 : vector<14x128xf32>
    %263 = vector.extract_strided_slice %0 {offsets = [7, 4, 0], sizes = [1, 14, 4], strides = [1, 1, 1]} : vector<8x18x4xbf16> to vector<1x14x4xbf16>
    %264 = vector.shape_cast %263 : vector<1x14x4xbf16> to vector<14x4xbf16>
    %c4_169 = arith.constant 4 : index
    %c0_170 = arith.constant 0 : index
    %c0_171 = arith.constant 0 : index
    %265 = vector.load %arg2[%c4_169, %c0_170, %c0_171] : memref<5x4x128xbf16, #tpu.memory_space<vmem>>, vector<1x4x128xbf16>
    %266 = vector.shape_cast %265 : vector<1x4x128xbf16> to vector<4x128xbf16>
    %cst_172 = arith.constant dense<0.000000e+00> : vector<14x128xf32>
    %267 = tpu.matmul %264, %266, %cst_172 {dimension_numbers = #tpu.dot_dimension_numbers<[1], [0], [0], [1], [0, 0, 1, 1], [], []>} : vector<14x4xbf16>, vector<4x128xbf16>, vector<14x128xf32> -> vector<14x128xf32>
    %268 = arith.addf %262, %267 : vector<14x128xf32>
    %269 = arith.addf %268, %1 : vector<14x128xf32>
    %cst_173 = arith.constant 0.000000e+00 : f32
    %270 = vector.broadcast %cst_173 : f32 to vector<14x128xf32>
    %271 = arith.maximumf %269, %270 : vector<14x128xf32>
    %cst_174 = arith.constant dense<0xFF800000> : vector<128xf32>
    %272 = vector.multi_reduction <maximumf>, %271, %cst_174 [0] : vector<14x128xf32> to vector<128xf32>
    %273 = vector.shape_cast %272 : vector<128xf32> to vector<1x128xf32>
    %274 = tpu.concatenate %35, %69, %103, %137, %171, %205, %239, %273 in 0 : vector<1x128xf32>, vector<1x128xf32>, vector<1x128xf32>, vector<1x128xf32>, vector<1x128xf32>, vector<1x128xf32>, vector<1x128xf32>, vector<1x128xf32> -> vector<8x128xf32>
    %c0_175 = arith.constant 0 : index
    %c0_176 = arith.constant 0 : index
    %275 = vector.load %arg4[%c0_175, %c0_176] : memref<128x32xf32, #tpu.memory_space<vmem>>, vector<128x32xf32>
    %cst_177 = arith.constant dense<0.000000e+00> : vector<8x32xf32>
    %276 = tpu.matmul %274, %275, %cst_177 {dimension_numbers = #tpu.dot_dimension_numbers<[1], [0], [0], [1], [0, 0, 1, 1], [], []>} : vector<8x128xf32>, vector<128x32xf32>, vector<8x32xf32> -> vector<8x32xf32>
    %c0_178 = arith.constant 0 : index
    %c0_179 = arith.constant 0 : index
    %277 = vector.load %arg5[%c0_178, %c0_179] : memref<1x32xf32, #tpu.memory_space<vmem>>, vector<1x32xf32>
    %278 = vector.broadcast %277 : vector<1x32xf32> to vector<8x32xf32>
    %279 = arith.addf %276, %278 : vector<8x32xf32>
    %cst_180 = arith.constant 0.000000e+00 : f32
    %280 = vector.broadcast %cst_180 : f32 to vector<8x32xf32>
    %281 = arith.maximumf %279, %280 : vector<8x32xf32>
    %c0_181 = arith.constant 0 : index
    %c0_182 = arith.constant 0 : index
    %282 = vector.load %arg6[%c0_181, %c0_182] : memref<32x128xf32, #tpu.memory_space<vmem>>, vector<32x128xf32>
    %cst_183 = arith.constant dense<0.000000e+00> : vector<8x128xf32>
    %283 = tpu.matmul %281, %282, %cst_183 {dimension_numbers = #tpu.dot_dimension_numbers<[1], [0], [0], [1], [0, 0, 1, 1], [], []>} : vector<8x32xf32>, vector<32x128xf32>, vector<8x128xf32> -> vector<8x128xf32>
    %c0_184 = arith.constant 0 : index
    %c0_185 = arith.constant 0 : index
    %284 = vector.load %arg7[%c0_184, %c0_185] : memref<1x128xf32, #tpu.memory_space<vmem>>, vector<1x128xf32>
    %285 = vector.broadcast %284 : vector<1x128xf32> to vector<8x128xf32>
    %286 = arith.addf %283, %285 : vector<8x128xf32>
    %287 = tpu.transpose %286, [1, 0] : vector<8x128xf32> -> vector<128x8xf32>
    %cst_186 = arith.constant dense<0xFF800000> : vector<8xf32>
    %288 = vector.multi_reduction <maximumf>, %287, %cst_186 [0] : vector<128x8xf32> to vector<8xf32>
    %289 = vector.shape_cast %288 : vector<8xf32> to vector<1x8xf32>
    %290 = vector.broadcast %289 : vector<1x8xf32> to vector<128x8xf32>
    %291 = arith.subf %287, %290 : vector<128x8xf32>
    %292 = math.exp %291 : vector<128x8xf32>
    %cst_187 = arith.constant dense<0.000000e+00> : vector<8xf32>
    %293 = vector.multi_reduction <add>, %292, %cst_187 [0] : vector<128x8xf32> to vector<8xf32>
    %294 = vector.shape_cast %293 : vector<8xf32> to vector<1x8xf32>
    %295 = math.log %294 : vector<1x8xf32>
    %296 = arith.addf %289, %295 : vector<1x8xf32>
    %c0_188 = arith.constant 0 : index
    %c0_189 = arith.constant 0 : index
    %297 = vector.load %arg8[%c0_188, %c0_189] : memref<128x8xf32, #tpu.memory_space<vmem>>, vector<128x8xf32>
    %298 = arith.mulf %287, %297 : vector<128x8xf32>
    %cst_190 = arith.constant dense<0.000000e+00> : vector<8xf32>
    %299 = vector.multi_reduction <add>, %298, %cst_190 [0] : vector<128x8xf32> to vector<8xf32>
    %300 = vector.shape_cast %299 : vector<8xf32> to vector<1x8xf32>
    %301 = arith.subf %296, %300 : vector<1x8xf32>
    %c0_191 = arith.constant 0 : index
    %c0_192 = arith.constant 0 : index
    %302 = vector.load %arg9[%c0_191, %c0_192] : memref<1x8xf32, #tpu.memory_space<vmem>>, vector<1x8xf32>
    tpu.vector_store %arg9[%c0_191, %c0_192], %301 {strides = array<i32>} : memref<1x8xf32, #tpu.memory_space<vmem>>, vector<1x8xf32>,
    %303 = tpu.iota {dimensions = array<i32: 0>} : vector<128x8xi32>
    %304 = vector.broadcast %289 : vector<1x8xf32> to vector<128x8xf32>
    %305 = arith.cmpf oeq, %287, %304 : vector<128x8xf32>
    %c128_i32 = arith.constant 128 : i32
    %306 = vector.broadcast %c128_i32 : i32 to vector<128x8xi32>
    %307 = arith.select %305, %303, %306 : vector<128x8xi1>, vector<128x8xi32>
    %cst_193 = arith.constant dense<2147483647> : vector<8xi32>
    %308 = vector.multi_reduction <minsi>, %307, %cst_193 [0] : vector<128x8xi32> to vector<8xi32>
    %309 = vector.shape_cast %308 : vector<8xi32> to vector<1x8xi32>
    %c0_194 = arith.constant 0 : index
    %c0_195 = arith.constant 0 : index
    %310 = vector.load %arg10[%c0_194, %c0_195] : memref<1x8xi32, #tpu.memory_space<vmem>>, vector<1x8xi32>
    tpu.vector_store %arg10[%c0_194, %c0_195], %309 {strides = array<i32>} : memref<1x8xi32, #tpu.memory_space<vmem>>, vector<1x8xi32>,
    return
  }
  func.func @transform_0(%arg0: i32) -> (i32, i32, i32) {
    %c0_i32 = arith.constant 0 : i32
    %c0_i32_0 = arith.constant 0 : i32
    %c0_i32_1 = arith.constant 0 : i32
    return %arg0, %c0_i32, %c0_i32_0 : i32, i32, i32
  }
  func.func @transform_1(%arg0: i32) -> (i32, i32, i32) {
    %c0_i32 = arith.constant 0 : i32
    %c0_i32_0 = arith.constant 0 : i32
    %c0_i32_1 = arith.constant 0 : i32
    %c0_i32_2 = arith.constant 0 : i32
    return %c0_i32, %c0_i32_0, %c0_i32_1 : i32, i32, i32
  }
  func.func @transform_2(%arg0: i32) -> (i32, i32) {
    %c0_i32 = arith.constant 0 : i32
    %c0_i32_0 = arith.constant 0 : i32
    %c0_i32_1 = arith.constant 0 : i32
    return %c0_i32, %c0_i32_0 : i32, i32
  }
  func.func @transform_3(%arg0: i32) -> (i32, i32) {
    %c0_i32 = arith.constant 0 : i32
    %c0_i32_0 = arith.constant 0 : i32
    %c0_i32_1 = arith.constant 0 : i32
    return %c0_i32, %c0_i32_0 : i32, i32
  }
  func.func @transform_4(%arg0: i32) -> (i32, i32) {
    %c0_i32 = arith.constant 0 : i32
    %c0_i32_0 = arith.constant 0 : i32
    %c0_i32_1 = arith.constant 0 : i32
    return %c0_i32, %c0_i32_0 : i32, i32
  }
  func.func @transform_5(%arg0: i32) -> (i32, i32) {
    %c0_i32 = arith.constant 0 : i32
    %c0_i32_0 = arith.constant 0 : i32
    %c0_i32_1 = arith.constant 0 : i32
    return %c0_i32, %c0_i32_0 : i32, i32
  }
  func.func @transform_6(%arg0: i32) -> (i32, i32) {
    %c0_i32 = arith.constant 0 : i32
    %c0_i32_0 = arith.constant 0 : i32
    %c0_i32_1 = arith.constant 0 : i32
    return %c0_i32, %c0_i32_0 : i32, i32
  }
  func.func @transform_7(%arg0: i32) -> (i32, i32) {
    %c0_i32 = arith.constant 0 : i32
    %c0_i32_0 = arith.constant 0 : i32
    return %c0_i32, %arg0 : i32, i32
  }
  func.func @transform_8(%arg0: i32) -> (i32, i32) {
    %c0_i32 = arith.constant 0 : i32
    %c0_i32_0 = arith.constant 0 : i32
    return %c0_i32, %arg0 : i32, i32
  }
  func.func @transform_9(%arg0: i32) -> (i32, i32) {
    %c0_i32 = arith.constant 0 : i32
    %c0_i32_0 = arith.constant 0 : i32
    return %c0_i32, %arg0 : i32, i32
  }
}

</mosaic_0001>

<bundles_post_ra>
// kernel: tpu_custom_call.1
= control target key start
LH: loop header
LB: loop body
LE: loop exit
PB: predicated region body
PF: predicated region fallthrough
CT: control target
= control target key end

     0   :  { %15 = vsyncpa [#allocation3], 0  ;;  %vm79_vm0 = vcmask 1041408   ;;  %v3339_v2 = vmov 0.0   ;;  %vm3340_vm1 = vmmov 0   ;;  %vm75_vm2 = vcmask 31744   ;;  %s4080_s0 = inlined_call_operand.vmem [shape: bf16[8,18,4], index: 0, kind: input, shape index: {}]   ;;  %s4081_s1 = inlined_call_operand.vmem [shape: bf16[5,4,128], index: 1, kind: input, shape index: {}]   ;;  %s4082_s2 = inlined_call_operand.vmem [shape: f32[14,128], index: 2, kind: input, shape index: {}]   ;;  %s4083_s3 = inlined_call_operand.vmem [shape: f32[128,32], index: 3, kind: input, shape index: {}]   ;;  %s4084_s4 = inlined_call_operand.vmem [shape: f32[1,32], index: 4, kind: input, shape index: {}]   ;;  %s4085_s5 = inlined_call_operand.vmem [shape: f32[32,128], index: 5, kind: input, shape index: {}]   ;;  %s4086_s6 = inlined_call_operand.vmem [shape: f32[1,128], index: 6, kind: input, shape index: {}]   ;;  %s4087_s7 = inlined_call_operand.vmem [shape: f32[128,8], index: 7, kind: input, shape index: {}]   ;;  %s4088_s8 = inlined_call_operand.hbm [shape: f32[1,8], index: 8, kind: output, shape index: {0}]   ;;  %s4089_s9 = inlined_call_operand.hbm [shape: s32[1,8], index: 9, kind: output, shape index: {1}]  }
   0x1   :  { %v2755_v0 = vld [vmem:[%s4081_s1 + $0x2] sm:$0x3]  ;;  %2920 = vmatprep.subr.bf16.mxu1 %v3339_v2  ;;  %2922 = vmatprep.mubr.msk.bf16.mxu1 %vm3340_vm1, %v3339_v2  ;;  %v2759_v6 = vld [vmem:[%s4081_s1 + $0x4] sm:$0x3]  ;;  %v60_v7 = vld [vmem:[%s4081_s1] sm:$0x3] }
   0x2   :  { %v3241_v1 = vld [vmem:[%s4080_s0] sm:$0xff]   ;;  %v3402_v3 = vsel %vm79_vm0, %v2755_v0, 0  ;;  %2932 = vmatprep.subr.bf16.mxu0 %v3339_v2  ;;  %v3416_v8 = vsel %vm79_vm0, %v2759_v6, 0  ;;  %2934 = vmatprep.mubr.msk.bf16.mxu0 %vm3340_vm1, %v3339_v2  ;;  %v2764_v11 = vld [vmem:[%s4081_s1 + $0x8] sm:$0x3]  ;;  %v3429_v14 = vsel %vm79_vm0, %v60_v7, 0 }
   0x3   :  { %2921 = vmatpush3.bf16.msra.mxu1 %v3402_v3  ;;  %v69_v4 = vshrl.u32 %v3241_v1, 16  ;;  %v71_v5 = vshll.u32 %v3241_v1, 16  ;;  %v172_v9 = vrot.slane %v3241_v1, 1  ;;  %2933 = vmatpush3.bf16.msra.mxu0 %v3416_v8  ;;  %v3426_v12 = vsel %vm79_vm0, %v2764_v11, 0  ;;  %v2761_v18 = vld [vmem:[%s4081_s1 + $0x6] sm:$0x3] }
   0x4   :  { %2926 = vmatprep.subr.bf16.mxu1 %v3339_v2  ;;  %2944 = vmatprep.subr.bf16.mxu0 %v3339_v2  ;;  %v3242_v15 = vld [vmem:[%s4080_s0 + $0x8] ss:$0 sps:$4 sm:$0x11]   ;;  %v288_v16 = vrot.slane %v3241_v1, 2  ;;  %vm287_vm3 = vcmask 1045504   ;;  %v3449_v23 = vsel %vm79_vm0, %v2761_v18, 0 }
   0x5   :  { %v73_v10 = vrot.slane %v71_v5, 1  ;;  %v289_v17 = vrot.slane %v3242_v15, 2  ;;  %v228_v20 = vrot.slane %v69_v4, 1  ;;  %v229_v21 = vrot.slane %v71_v5, 2  ;;  %v3243_v24 = vld [vmem:[%s4080_s0 + $0xc] sm:$0xff]   ;;  %v3245_v34 = vld [vmem:[%s4080_s0 + $0x18] sm:$0xff]  }
   0x6   :  { %2935 = vmatmul.mubr.msk.bf16.vlgmr.msra.gmra.mrb[0].mxu0 %vm75_vm2, %v172_v9  ;;  %v232_v22 = vshll.u32 %v3242_v15, 16  ;;  %v3244_v25 = vld [vmem:[%s4080_s0 + $0x14] ss:$0 sps:$4 sm:$0x11]   ;;  %vm227_vm4 = vsmask.f32 6400 }
   0x7   :  { %v74_v13 = vor.u32 %v73_v10, %v69_v4  ;;  %2945 = vmatpush3.bf16.msra.mxu0 %v3426_v12  ;;  %2946 = vmatprep.mubr.msk.bf16.mxu0 %vm3340_vm1, %v3339_v2  ;;  %v290_v19 = vsel %vm287_vm3, %v288_v16, %v289_v17  ;;  %v230_v26 = vor.u32 %v229_v21, %v228_v20  ;;  %v359_v28 = vshrl.u32 %v3243_v24, 16 }
   0x8   :  { %2956 = vmatprep.subr.bf16.mxu0 %v3339_v2  ;;  %v234_v27 = vrot.slane %v232_v22, 2  ;;  %v361_v29 = vshll.u32 %v3243_v24, 16  ;;  %v506_v32 = vshll.u32 %v3244_v25, 16 }
   0x9   :  { %2923 = vmatmul.mubr.msk.bf16.vlgmr.msra.gmra.mrb[0].mxu1 %vm75_vm2, %v74_v13  ;;  %v502_v30 = vrot.slane %v359_v28, 1 }
   0xa   :  { %2927 = vmatpush3.bf16.msra.mxu1 %v3429_v14  ;;  %2928 = vmatprep.mubr.msk.bf16.mxu1 %vm3340_vm1, %v3339_v2  ;;  %v503_v31 = vrot.slane %v361_v29, 2  ;;  %v235_v33 = vsel %vm227_vm4, %v230_v26, %v234_v27  ;;  %v363_v35 = vrot.slane %v361_v29, 1  ;;  %v508_v37 = vrot.slane %v506_v32, 2 }
   0xb   :  { %2938 = vmatprep.subr.bf16.mxu1 %v3339_v2 }
   0xc   :  { %v504_v36 = vor.u32 %v503_v31, %v502_v30 }
   0xe   :  { %2947 = vmatmul.mubr.msk.bf16.vlgmr.msra.gmra.mrb[4].mxu0 %vm75_vm2, %v290_v19 }
   0xf   :  { %2957 = vmatpush3.bf16.msra.mxu0 %v3429_v14  ;;  %2958 = vmatprep.mubr.msk.bf16.mxu0 %vm3340_vm1, %v3339_v2 }
  0x10   :  { %2968 = vmatprep.subr.bf16.mxu0 %v3339_v2 }
  0x11   :  { %2929 = vmatmul.mubr.msk.bf16.vlgmr.msra.gmra.mrb[4].mxu1 %vm75_vm2, %v3241_v1 }
  0x12   :  { %2939 = vmatpush3.bf16.msra.mxu1 %v3449_v23  ;;  %2940 = vmatprep.mubr.msk.bf16.mxu1 %vm3340_vm1, %v3339_v2 }
  0x13   :  { %2950 = vmatprep.subr.bf16.mxu1 %v3339_v2 }
  0x16   :  { %2959 = vmatmul.mubr.msk.bf16.vlgmr.msra.gmra.mrb[8].mxu0 %vm75_vm2, %v3243_v24 }
  0x17   :  { %2969 = vmatpush3.bf16.msra.mxu0 %v3449_v23  ;;  %2970 = vmatprep.mubr.msk.bf16.mxu0 %vm3340_vm1, %v3339_v2 }
  0x19   :  { %2941 = vmatmul.mubr.msk.bf16.vlgmr.msra.gmra.mrb[8].mxu1 %vm75_vm2, %v235_v33 }
  0x1a   :  { %2951 = vmatpush3.bf16.msra.mxu1 %v3402_v3  ;;  %2952 = vmatprep.mubr.msk.bf16.mxu1 %vm3340_vm1, %v3339_v2 }
  0x1b   :  { %2962 = vmatprep.subr.bf16.mxu1 %v3339_v2 }
  0x1c   :  { %16 = vsyncpa [#allocation5], 0  ;;  %2980 = vmatprep.subr.bf16.mxu0 %v3339_v2  ;;  %v625_v38 = vshll.u32 %v3245_v34, 16  ;;  %v364_v39 = vor.u32 %v363_v35, %v359_v28  ;;  %v509_v40 = vsel %vm227_vm4, %v504_v36, %v508_v37  ;;  %v623_v41 = vshrl.u32 %v3245_v34, 16  ;;  %v3247_v56 = vld [vmem:[%s4080_s0 + $0x24] sm:$0xff]   ;;  %v3249_v4 = vld [vmem:[%s4080_s0 + $0x30] sm:$0xff]  }
  0x1d   :  { %v452_v44 = vrot.slane %v3243_v24, 1  ;;  %v556_v45 = vrot.slane %v3243_v24, 2  ;;  %v557_v46 = vrot.slane %v3244_v25, 2  ;;  %v716_v47 = vrot.slane %v3245_v34, 1  ;;  %v3251_v30 = vld [vmem:[%s4080_s0 + $0x3c] sm:$0xff]  }
  0x1e   :  { %2971 = vmatmul.mubr.msk.bf16.vlgmr.msra.gmra.mrb[12].mxu0 %vm75_vm2, %v509_v40  ;;  %v627_v42 = vrot.slane %v625_v38, 1  ;;  %v3246_v49 = vld [vmem:[%s4080_s0 + $0x20] ss:$0 sps:$4 sm:$0x11]   ;;  %v820_v50 = vrot.slane %v3245_v34, 2  ;;  %v766_v53 = vrot.slane %v623_v41, 1 }
  0x1f   :  { %2981 = vmatpush3.bf16.msra.mxu0 %v3402_v3  ;;  %2982 = vmatprep.mubr.msk.bf16.mxu0 %vm3340_vm1, %v3339_v2  ;;  %v558_v48 = vsel %vm287_vm3, %v556_v45, %v557_v46  ;;  %v821_v51 = vrot.slane %v3246_v49, 2  ;;  %v767_v54 = vrot.slane %v625_v38, 2  ;;  %v770_v55 = vshll.u32 %v3246_v49, 16  ;;  %v3248_v57 = vld [vmem:[%s4080_s0 + $0x2c] ss:$0 sps:$4 sm:$0x11]  }
  0x20   :  { %v628_v43 = vor.u32 %v627_v42, %v623_v41  ;;  %2992 = vmatprep.subr.bf16.mxu0 %v3339_v2  ;;  %v887_v60 = vshrl.u32 %v3247_v56, 16  ;;  %v889_v61 = vshll.u32 %v3247_v56, 16  ;;  %v1034_v0 = vshll.u32 %v3248_v57, 16  ;;  %v3250_v22 = vld [vmem:[%s4080_s0 + $0x38] ss:$0 sps:$4 sm:$0x11]  }
  0x21   :  { %2953 = vmatmul.mubr.msk.bf16.vlgmr.msra.gmra.mrb[12].mxu1 %vm75_vm2, %v364_v39  ;;  %v822_v52 = vsel %vm287_vm3, %v820_v50, %v821_v51  ;;  %v768_v58 = vor.u32 %v767_v54, %v766_v53  ;;  %v772_v59 = vrot.slane %v770_v55, 2  ;;  %v1153_v9 = vshll.u32 %v3249_v4, 16  ;;  %v3252_v31 = vld [vmem:[%s4080_s0 + $0x44] ss:$0 sps:$4 sm:$0x11]   ;;  %v3253_v40 = vld [vmem:[%s4080_s0 + $0x48] sm:$0xff]  }
  0x22   :  { %2963 = vmatpush3.bf16.msra.mxu1 %v3416_v8  ;;  %2964 = vmatprep.mubr.msk.bf16.mxu1 %vm3340_vm1, %v3339_v2  ;;  %v1030_v62 = vrot.slane %v887_v60, 1  ;;  %v1031_v63 = vrot.slane %v889_v61, 2  ;;  %v891_v5 = vrot.slane %v889_v61, 1  ;;  %v1036_v7 = vrot.slane %v1034_v0, 2 }
  0x23   :  { %2974 = vmatprep.subr.bf16.mxu1 %v3339_v2  ;;  %v773_v1 = vsel %vm227_vm4, %v768_v58, %v772_v59  ;;  %v1151_v13 = vshrl.u32 %v3249_v4, 16  ;;  %v1155_v15 = vrot.slane %v1153_v9, 1  ;;  %v980_v17 = vrot.slane %v3247_v56, 1  ;;  %v3254_v55 = vld [vmem:[%s4080_s0 + $0x50] ss:$0 sps:$4 sm:$0x11]  }
  0x24   :  { %v1032_v6 = vor.u32 %v1031_v63, %v1030_v62  ;;  %v892_v10 = vor.u32 %v891_v5, %v887_v60  ;;  %v1084_v18 = vrot.slane %v3247_v56, 2  ;;  %v1085_v19 = vrot.slane %v3248_v57, 2  ;;  %v3255_v62 = vld [vmem:[%s4080_s0 + $0x54] sm:$0xff]   ;;  %v3256_v63 = vld [vmem:[%s4080_s0 + $0x5c] ss:$0 sps:$4 sm:$0x11]  }
  0x25   :  { %v1156_v16 = vor.u32 %v1155_v15, %v1151_v13  ;;  %v1244_v20 = vrot.slane %v3249_v4, 1  ;;  %v1348_v24 = vrot.slane %v3249_v4, 2  ;;  %v1349_v25 = vrot.slane %v3250_v22, 2 }
  0x26   :  { %2983 = vmatmul.mubr.msk.bf16.vlgmr.msra.gmra.mrb[16].mxu0 %vm75_vm2, %v628_v43  ;;  %v1037_v11 = vsel %vm227_vm4, %v1032_v6, %v1036_v7  ;;  %v1086_v21 = vsel %vm287_vm3, %v1084_v18, %v1085_v19  ;;  %v1294_v27 = vrot.slane %v1151_v13, 1  ;;  %v1295_v28 = vrot.slane %v1153_v9, 2 }
  0x27   :  { %2993 = vmatpush3.bf16.msra.mxu0 %v3416_v8  ;;  %2994 = vmatprep.mubr.msk.bf16.mxu0 %vm3340_vm1, %v3339_v2  ;;  %v1350_v26 = vsel %vm287_vm3, %v1348_v24, %v1349_v25  ;;  %v1298_v29 = vshll.u32 %v3250_v22, 16  ;;  %v1417_v35 = vshll.u32 %v3251_v30, 16  ;;  %v1562_v38 = vshll.u32 %v3252_v31, 16 }
  0x28   :  { %3004 = vmatprep.subr.bf16.mxu0 %v3339_v2  ;;  %v1296_v32 = vor.u32 %v1295_v28, %v1294_v27  ;;  %v1508_v50 = vrot.slane %v3251_v30, 1  ;;  %v1612_v51 = vrot.slane %v3251_v30, 2  ;;  %v1772_v53 = vrot.slane %v3253_v40, 1 }
  0x29   :  { %2965 = vmatmul.mubr.msk.bf16.vlgmr.msra.gmra.mrb[16].mxu1 %vm75_vm2, %v452_v44  ;;  %v1300_v33 = vrot.slane %v1298_v29, 2  ;;  %v1559_v37 = vrot.slane %v1417_v35, 2  ;;  %v1419_v41 = vrot.slane %v1417_v35, 1  ;;  %v1564_v43 = vrot.slane %v1562_v38, 2 }
  0x2a   :  { %2975 = vmatpush3.bf16.msra.mxu1 %v3426_v12  ;;  %2976 = vmatprep.mubr.msk.bf16.mxu1 %vm3340_vm1, %v3339_v2  ;;  %v1681_v44 = vshll.u32 %v3253_v40, 16  ;;  %v1877_v57 = vrot.slane %v3254_v55, 2  ;;  %v1826_v61 = vshll.u32 %v3254_v55, 16  ;;  %v1945_v5 = vshll.u32 %v3255_v62, 16  ;;  %v2214_v55 = vld [vmem:[%s4083_s3 + $0x8] sm:$0xff] }
  0x2b   :  { %2986 = vmatprep.subr.bf16.mxu1 %v3339_v2  ;;  %v1301_v39 = vsel %vm227_vm4, %v1296_v32, %v1300_v33  ;;  %v2090_v7 = vshll.u32 %v3256_v63, 16  ;;  %vm2201_vm5 = vcmask 1040384   ;;  %vm2204_vm6 = vcmask 1042432  }
  0x2c   :  { %v1823_v60 = vrot.slane %v1681_v44, 2  ;;  %v2087_v6 = vrot.slane %v1945_v5, 2  ;;  %vm2206_vm7 = vcmask 1043456   ;;  %vm2208_vm8 = vcmask 1044480  }
  0x2d   :  { %v2092_v13 = vrot.slane %v2090_v7, 2  ;;  %v2215_v7 = vld [vmem:[%s4083_s3 + $0x10] sm:$0xff]  ;;  %vm2211_vm9 = vcmask 1046528   ;;  %vm2318_vm10 = vcmask 261120   ;;  %vm2424_vm11 = vcmask 64512  }
  0x2e   :  { %2995 = vmatmul.mubr.msk.bf16.vlgmr.msra.gmra.mrb[20].mxu0 %vm75_vm2, %v716_v47  ;;  %v1679_v47 = vshrl.u32 %v3253_v40, 16 }
  0x2f   :  { %3005 = vmatpush3.bf16.msra.mxu0 %v3426_v12  ;;  %3006 = vmatprep.mubr.msk.bf16.mxu0 %vm3340_vm1, %v3339_v2 }
  0x30   :  { %3016 = vmatprep.subr.bf16.mxu0 %v3339_v2  ;;  %v1822_v59 = vrot.slane %v1679_v47, 1 }
  0x31   :  { %2977 = vmatmul.mubr.msk.bf16.vlgmr.msra.gmra.mrb[20].mxu1 %vm75_vm2, %v558_v48  ;;  %v1683_v48 = vrot.slane %v1681_v44, 1 }
  0x32   :  { %2987 = vmatpush3.bf16.msra.mxu1 %v3429_v14  ;;  %2988 = vmatprep.mubr.msk.bf16.mxu1 %vm3340_vm1, %v3339_v2  ;;  %v1824_v0 = vor.u32 %v1823_v60, %v1822_v59 }
  0x33   :  { %2998 = vmatprep.subr.bf16.mxu1 %v3339_v2  ;;  %v1684_v49 = vor.u32 %v1683_v48, %v1679_v47 }
  0x36   :  { %3007 = vmatmul.mubr.msk.bf16.vlgmr.msra.gmra.mrb[24].mxu0 %vm75_vm2, %v822_v52  ;;  %v1613_v52 = vrot.slane %v3252_v31, 2 }
  0x37   :  { %3017 = vmatpush3.bf16.msra.mxu0 %v3429_v14  ;;  %3018 = vmatprep.mubr.msk.bf16.mxu0 %vm3340_vm1, %v3339_v2 }
  0x38   :  { %3028 = vmatprep.subr.bf16.mxu0 %v3339_v2  ;;  %v1614_v54 = vsel %vm287_vm3, %v1612_v51, %v1613_v52 }
  0x39   :  { %2989 = vmatmul.mubr.msk.bf16.vlgmr.msra.gmra.mrb[24].mxu1 %vm75_vm2, %v3245_v34  ;;  %v1415_v34 = vshrl.u32 %v3251_v30, 16 }
  0x3a   :  { %2999 = vmatpush3.bf16.msra.mxu1 %v3449_v23  ;;  %3000 = vmatprep.mubr.msk.bf16.mxu1 %vm3340_vm1, %v3339_v2 }
  0x3b   :  { %3010 = vmatprep.subr.bf16.mxu1 %v3339_v2  ;;  %v1558_v36 = vrot.slane %v1415_v34, 1  ;;  %v1420_v45 = vor.u32 %v1419_v41, %v1415_v34 }
  0x3d   :  { %v1560_v42 = vor.u32 %v1559_v37, %v1558_v36 }
  0x3e   :  { %3019 = vmatmul.mubr.msk.bf16.vlgmr.msra.gmra.mrb[28].mxu0 %vm75_vm2, %v3247_v56  ;;  %v1876_v56 = vrot.slane %v3253_v40, 2 }
  0x3f   :  { %3029 = vmatpush3.bf16.msra.mxu0 %v3449_v23  ;;  %3030 = vmatprep.mubr.msk.bf16.mxu0 %vm3340_vm1, %v3339_v2  ;;  %v1565_v46 = vsel %vm227_vm4, %v1560_v42, %v1564_v43 }
  0x40   :  { %3040 = vmatprep.subr.bf16.mxu0 %v3339_v2  ;;  %v1878_v58 = vsel %vm287_vm3, %v1876_v56, %v1877_v57 }
  0x41   :  { %3001 = vmatmul.mubr.msk.bf16.vlgmr.msra.gmra.mrb[28].mxu1 %vm75_vm2, %v773_v1  ;;  %v1828_v1 = vrot.slane %v1826_v61, 2 }
  0x42   :  { %3011 = vmatpush3.bf16.msra.mxu1 %v3402_v3  ;;  %3012 = vmatprep.mubr.msk.bf16.mxu1 %vm3340_vm1, %v3339_v2 }
  0x43   :  { %3022 = vmatprep.subr.bf16.mxu1 %v3339_v2  ;;  %v1829_v9 = vsel %vm227_vm4, %v1824_v0, %v1828_v1 }
  0x46   :  { %3031 = vmatmul.mubr.msk.bf16.vlgmr.msra.gmra.mrb[32].mxu0 %vm75_vm2, %v1037_v11 }
  0x47   :  { %3041 = vmatpush3.bf16.msra.mxu0 %v3402_v3  ;;  %3042 = vmatprep.mubr.msk.bf16.mxu0 %vm3340_vm1, %v3339_v2 }
  0x48   :  { %3052 = vmatprep.subr.bf16.mxu0 %v3339_v2 }
  0x49   :  { %3013 = vmatmul.mubr.msk.bf16.vlgmr.msra.gmra.mrb[32].mxu1 %vm75_vm2, %v892_v10  ;;  %v1947_v10 = vrot.slane %v1945_v5, 1 }
  0x4a   :  { %3023 = vmatpush3.bf16.msra.mxu1 %v3416_v8  ;;  %3024 = vmatprep.mubr.msk.bf16.mxu1 %vm3340_vm1, %v3339_v2 }
  0x4b   :  { %3034 = vmatprep.subr.bf16.mxu1 %v3339_v2 }
  0x4e   :  { %3043 = vmatmul.mubr.msk.bf16.vlgmr.msra.gmra.mrb[36].mxu0 %vm75_vm2, %v1156_v16 }
  0x4f   :  { %3053 = vmatpush3.bf16.msra.mxu0 %v3416_v8  ;;  %3054 = vmatprep.mubr.msk.bf16.mxu0 %vm3340_vm1, %v3339_v2 }
  0x50   :  { %3064 = vmatprep.subr.bf16.mxu0 %v3339_v2 }
  0x51   :  { %3025 = vmatmul.mubr.msk.bf16.vlgmr.msra.gmra.mrb[36].mxu1 %vm75_vm2, %v980_v17  ;;  %v2141_v17 = vrot.slane %v3256_v63, 2  ;;  %v3341_v63 = vmov 0.0|0.0  }
  0x52   :  { %3035 = vmatpush3.bf16.msra.mxu1 %v3426_v12  ;;  %3036 = vmatprep.mubr.msk.bf16.mxu1 %vm3340_vm1, %v3339_v2 }
  0x53   :  { %3046 = vmatprep.subr.bf16.mxu1 %v3339_v2 }
  0x56   :  { %3055 = vmatmul.mubr.msk.bf16.vlgmr.msra.gmra.mrb[40].mxu0 %vm75_vm2, %v1244_v20 }
  0x57   :  { %3065 = vmatpush3.bf16.msra.mxu0 %v3426_v12  ;;  %3066 = vmatprep.mubr.msk.bf16.mxu0 %vm3340_vm1, %v3339_v2 }
  0x58   :  { %3076 = vmatprep.subr.bf16.mxu0 %v3339_v2 }
  0x59   :  { %3037 = vmatmul.mubr.msk.bf16.vlgmr.msra.gmra.mrb[40].mxu1 %vm75_vm2, %v1086_v21 }
  0x5a   :  { %3047 = vmatpush3.bf16.msra.mxu1 %v3429_v14  ;;  %3048 = vmatprep.mubr.msk.bf16.mxu1 %vm3340_vm1, %v3339_v2 }
  0x5b   :  { %3058 = vmatprep.subr.bf16.mxu1 %v3339_v2 }
  0x5e   :  { %3067 = vmatmul.mubr.msk.bf16.vlgmr.msra.gmra.mrb[44].mxu0 %vm75_vm2, %v1350_v26 }
  0x5f   :  { %3077 = vmatpush3.bf16.msra.mxu0 %v3429_v14  ;;  %3078 = vmatprep.mubr.msk.bf16.mxu0 %vm3340_vm1, %v3339_v2 }
  0x60   :  { %3088 = vmatprep.subr.bf16.mxu0 %v3339_v2 }
  0x61   :  { %3049 = vmatmul.mubr.msk.bf16.vlgmr.msra.gmra.mrb[44].mxu1 %vm75_vm2, %v3249_v4  ;;  %v1943_v4 = vshrl.u32 %v3255_v62, 16 }
  0x62   :  { %3059 = vmatpush3.bf16.msra.mxu1 %v3449_v23  ;;  %3060 = vmatprep.mubr.msk.bf16.mxu1 %vm3340_vm1, %v3339_v2 }
  0x63   :  { %3070 = vmatprep.subr.bf16.mxu1 %v3339_v2  ;;  %v1948_v15 = vor.u32 %v1947_v10, %v1943_v4 }
  0x66   :  { %3079 = vmatmul.mubr.msk.bf16.vlgmr.msra.gmra.mrb[48].mxu0 %vm75_vm2, %v3251_v30 }
  0x67   :  { %3089 = vmatpush3.bf16.msra.mxu0 %v3449_v23  ;;  %3090 = vmatprep.mubr.msk.bf16.mxu0 %vm3340_vm1, %v3339_v2 }
  0x68   :  { %3100 = vmatprep.subr.bf16.mxu0 %v3339_v2 }
  0x69   :  { %3061 = vmatmul.mubr.msk.bf16.vlgmr.msra.gmra.mrb[48].mxu1 %vm75_vm2, %v1301_v39 }
  0x6a   :  { %3071 = vmatpush3.bf16.msra.mxu1 %v3402_v3  ;;  %3072 = vmatprep.mubr.msk.bf16.mxu1 %vm3340_vm1, %v3339_v2 }
  0x6b   :  { %3082 = vmatprep.subr.bf16.mxu1 %v3339_v2 }
  0x6e   :  { %3091 = vmatmul.mubr.msk.bf16.vlgmr.msra.gmra.mrb[52].mxu0 %vm75_vm2, %v1565_v46  ;;  %v3695_v46 = vld [vmem:[%s4082_s2] sm:$0xff] }
  0x6f   :  { %3101 = vmatpush3.bf16.msra.mxu0 %v3402_v3  ;;  %3102 = vmatprep.mubr.msk.bf16.mxu0 %vm3340_vm1, %v3339_v2 }
  0x70   :  { %3112 = vmatprep.subr.bf16.mxu0 %v3339_v2 }
  0x71   :  { %3073 = vmatmul.mubr.msk.bf16.vlgmr.msra.gmra.mrb[52].mxu1 %vm75_vm2, %v1420_v45 }
  0x72   :  { %3083 = vmatpush3.bf16.msra.mxu1 %v3416_v8  ;;  %3084 = vmatprep.mubr.msk.bf16.mxu1 %vm3340_vm1, %v3339_v2 }
  0x73   :  { %3094 = vmatprep.subr.bf16.mxu1 %v3339_v2 }
  0x76   :  { %3103 = vmatmul.mubr.msk.bf16.vlgmr.msra.gmra.mrb[56].mxu0 %vm75_vm2, %v1684_v49  ;;  %v3700_v49 = vld [vmem:[%s4082_s2 + $0x8] sm:$0x3f] }
  0x77   :  { %3113 = vmatpush3.bf16.msra.mxu0 %v3416_v8  ;;  %3114 = vmatprep.mubr.msk.bf16.mxu0 %vm3340_vm1, %v3339_v2 }
  0x78   :  { %3124 = vmatprep.subr.bf16.mxu0 %v3339_v2 }
  0x79   :  { %3085 = vmatmul.mubr.msk.bf16.vlgmr.msra.gmra.mrb[56].mxu1 %vm75_vm2, %v1508_v50 }
  0x7a   :  { %3095 = vmatpush3.bf16.msra.mxu1 %v3426_v12  ;;  %3096 = vmatprep.mubr.msk.bf16.mxu1 %vm3340_vm1, %v3339_v2 }
  0x7b   :  { %3106 = vmatprep.subr.bf16.mxu1 %v3339_v2 }
  0x7e   :  { %3115 = vmatmul.mubr.msk.bf16.vlgmr.msra.gmra.mrb[60].mxu0 %vm75_vm2, %v1772_v53 }
  0x7f   :  { %3125 = vmatpush3.bf16.msra.mxu0 %v3426_v12  ;;  %3126 = vmatprep.mubr.msk.bf16.mxu0 %vm3340_vm1, %v3339_v2 }
  0x80   :  { %3136 = vmatprep.subr.bf16.mxu0 %v3339_v2 }
  0x81   :  { %3097 = vmatmul.mubr.msk.bf16.vlgmr.msra.gmra.mrb[60].mxu1 %vm75_vm2, %v1614_v54  ;;  %v2213_v54 = vld [vmem:[%s4083_s3] sm:$0xff] }
  0x82   :  { %3107 = vmatpush3.bf16.msra.mxu1 %v3429_v14  ;;  %3108 = vmatprep.mubr.msk.bf16.mxu1 %vm3340_vm1, %v3339_v2 }
  0x83   :  { %3118 = vmatprep.subr.bf16.mxu1 %v3339_v2 }
  0x86   :  { %3127 = vmatmul.mubr.msk.bf16.vlgmr.msra.gmra.mrb[64].mxu0 %vm75_vm2, %v1878_v58  ;;  %v3207_v58 = vpack.c.bf16 %v2214_v55, %v2213_v54 }
  0x87   :  { %3137 = vmatpush3.bf16.msra.mxu0 %v3429_v14  ;;  %3138 = vmatprep.mubr.msk.bf16.mxu0 %vm3340_vm1, %v3339_v2  ;;  %v2086_v14 = vrot.slane %v1943_v4, 1 }
  0x88   :  { %3148 = vmatprep.subr.bf16.mxu0 %v3339_v2 }
  0x89   :  { %3109 = vmatmul.mubr.msk.bf16.vlgmr.msra.gmra.mrb[64].mxu1 %vm75_vm2, %v3253_v40  ;;  %v2088_v11 = vor.u32 %v2087_v6, %v2086_v14 }
  0x8a   :  { %3119 = vmatpush3.bf16.msra.mxu1 %v3449_v23  ;;  %3120 = vmatprep.mubr.msk.bf16.mxu1 %vm3340_vm1, %v3339_v2 }
  0x8b   :  { %3130 = vmatprep.subr.bf16.mxu1 %v3339_v2  ;;  %v2093_v16 = vsel %vm227_vm4, %v2088_v11, %v2092_v13 }
  0x8e   :  { %3139 = vmatmul.mubr.msk.bf16.vlgmr.msra.gmra.mrb[68].mxu0 %vm75_vm2, %v3255_v62 }
  0x8f   :  { %3149 = vmatpush3.bf16.msra.mxu0 %v3449_v23  ;;  %3150 = vmatprep.mubr.msk.bf16.mxu0 %vm3340_vm1, %v3339_v2  ;;  %v2140_v23 = vrot.slane %v3255_v62, 2 }
  0x90   :  { %3206 = vmatprep.subr.bf16.mxu0 %v3341_v63 }
  0x91   :  { %3121 = vmatmul.mubr.msk.bf16.vlgmr.msra.gmra.mrb[68].mxu1 %vm75_vm2, %v1829_v9  ;;  %v2142_v18 = vsel %vm287_vm3, %v2140_v23, %v2141_v17  ;;  %v2216_v9 = vld [vmem:[%s4083_s3 + $0x18] sm:$0xff] }
  0x92   :  { %3131 = vmatpush3.bf16.msra.mxu1 %v3402_v3  ;;  %3132 = vmatprep.mubr.msk.bf16.mxu1 %vm3340_vm1, %v3339_v2  ;;  %v2036_v3 = vrot.slane %v3255_v62, 1  ;;  %v3210_v11 = vpack.c.bf16 %v2216_v9, %v2215_v7 }
  0x93   :  { %3142 = vmatprep.subr.bf16.mxu1 %v3339_v2 }
  0x96   :  { %3151 = vmatmul.mubr.msk.bf16.vlgmr.msra.gmra.mrb[72].mxu0 %vm75_vm2, %v2093_v16  ;;  %v2218_v16 = vld [vmem:[%s4083_s3 + $0x28] sm:$0xff] }
  0x97   :  { %3192 = vmatprep.mubr.msk.f32.mxu0 %vm3340_vm1, %v3339_v2  ;;  %3208 = vmatpush3.bf16.msra.mxu0 %v3207_v58  ;;  %v2227_v58 = vld [vmem:[%s4083_s3 + $0x70] sm:$0xff] }
  0x98   :  { %3209 = vmatprep.subr.bf16.mxu0 %v3341_v63 }
  0x99   :  { %3133 = vmatmul.mubr.msk.bf16.vlgmr.msra.gmra.mrb[72].mxu1 %vm75_vm2, %v1948_v15  ;;  %v2217_v15 = vld [vmem:[%s4083_s3 + $0x20] sm:$0xff] }
  0x9a   :  { %3143 = vmatpush3.bf16.msra.mxu1 %v3416_v8  ;;  %3144 = vmatprep.mubr.msk.bf16.mxu1 %vm3340_vm1, %v3339_v2  ;;  %v3213_v17 = vpack.c.bf16 %v2218_v16, %v2217_v15 }
  0x9b   :  { %3154 = vmatprep.subr.bf16.mxu1 %v3339_v2  ;;  %3211 = vmatpush3.bf16.msra.mxu0 %v3210_v11 }
  0x9c   :  { %3212 = vmatprep.subr.bf16.mxu0 %v3341_v63 }
  0x9f   :  { %3214 = vmatpush3.bf16.msra.mxu0 %v3213_v17 }
  0xa0   :  { %3215 = vmatprep.subr.bf16.mxu0 %v3341_v63 }
  0xa1   :  { %3145 = vmatmul.mubr.msk.bf16.vlgmr.msra.gmra.mrb[76].mxu1 %vm75_vm2, %v2036_v3 }
  0xa2   :  { %3155 = vmatpush3.bf16.msra.mxu1 %v3426_v12  ;;  %3156 = vmatprep.mubr.msk.bf16.mxu1 %vm3340_vm1, %v3339_v2 }
  0xa3   :  { %3230 = vmatprep.subr.bf16.mxu1 %v3341_v63 }
  0xa9   :  { %3157 = vmatmul.mubr.msk.bf16.vlgmr.msra.gmra.mrb[80].mxu1 %vm75_vm2, %v2142_v18 }
  0xaa   :  { %3203 = vmatprep.mubr.msk.f32.mxu1 %vm3340_vm1, %v3339_v2 }
  0xd9   :  { %v213_v8 = vpop.f32.mrb[0].mxu0 }
  0xda   :  { %v2936_v20 = vpop.f32.mrb[1].mxu0 }
  0xdb   :  { %v216_v22 = vpop.f32.mrb[2].mxu0 }
  0xdc   :  { %v117_v19 = vpop.f32.mrb[0].mxu1  ;;  %v2937_v25 = vpop.f32.mrb[3].mxu0 }
  0xdd   :  { %v2924_v21 = vpop.f32.mrb[1].mxu1 }
  0xde   :  { %v120_v24 = vpop.f32.mrb[2].mxu1 }
  0xdf   :  { %v2925_v12 = vpop.f32.mrb[3].mxu1 }
  0xe0   :  { %v2219_v12 = vld [vmem:[%s4083_s3 + $0x30] sm:$0xff] }
  0xe1   :  { %v331_v26 = vpop.f32.mrb[4].mxu0 }
  0xe2   :  { %v2948_v28 = vpop.f32.mrb[5].mxu0 }
  0xe3   :  { %v334_v31 = vpop.f32.mrb[6].mxu0 }
  0xe4   :  { %v163_v27 = vpop.f32.mrb[4].mxu1  ;;  %v2949_v33 = vpop.f32.mrb[7].mxu0 }
  0xe5   :  { %v164_v29 = vadd.f32 %v163_v27, %v117_v19  ;;  %v2930_v30 = vpop.f32.mrb[5].mxu1 }
  0xe6   :  { %v166_v32 = vpop.f32.mrb[6].mxu1  ;;  %v2221_v30 = vld [vmem:[%s4083_s3 + $0x40] sm:$0xff] }
  0xe7   :  { %v167_v34 = vadd.f32 %v166_v32, %v120_v24  ;;  %v220_v35 = vadd.f32 %v213_v8, %v164_v29  ;;  %v2931_v36 = vpop.f32.mrb[7].mxu1 }
  0xe9   :  { %v221_v2 = vadd.f32 %v216_v22, %v167_v34  ;;  %v445_v37 = vpop.f32.mrb[8].mxu0 }
  0xea   :  { %v2960_v39 = vpop.f32.mrb[9].mxu0 }
  0xeb   :  { %v448_v42 = vpop.f32.mrb[10].mxu0 }
  0xec   :  { %v276_v38 = vpop.f32.mrb[8].mxu1  ;;  %v2961_v44 = vpop.f32.mrb[11].mxu0 }
  0xed   :  { %v283_v40 = vadd.f32 %v276_v38, %v220_v35  ;;  %v2942_v41 = vpop.f32.mrb[9].mxu1 }
  0xee   :  { %v279_v43 = vpop.f32.mrb[10].mxu1 }
  0xef   :  { %v284_v45 = vadd.f32 %v279_v43, %v221_v2  ;;  %v338_v47 = vadd.f32 %v331_v26, %v283_v40  ;;  %v2943_v48 = vpop.f32.mrb[11].mxu1  ;;  %v2220_v26 = vld [vmem:[%s4083_s3 + $0x38] sm:$0xff] }
  0xf0   :  { %v3216_v27 = vpack.c.bf16 %v2220_v26, %v2219_v12  ;;  %v2224_v43 = vld [vmem:[%s4083_s3 + $0x58] sm:$0xff] }
  0xf1   :  { %v339_v50 = vadd.f32 %v334_v31, %v284_v45  ;;  %v340_v51 = vadd.f32 %v338_v47, %v3695_v46  ;;  %v547_v53 = vpop.f32.mrb[12].mxu0  ;;  %v2222_v31 = vld [vmem:[%s4083_s3 + $0x48] sm:$0xff] }
  0xf2   :  { %v2972_v57 = vpop.f32.mrb[13].mxu0  ;;  %3217 = vmatpush3.bf16.msra.mxu0 %v3216_v27  ;;  %v3219_v34 = vpack.c.bf16 %v2222_v31, %v2221_v30 }
  0xf3   :  { %v341_v52 = vadd.f32 %v339_v50, %v3700_v49  ;;  %v550_v62 = vpop.f32.mrb[14].mxu0  ;;  %v342_v0 = vmax.f32 %v340_v51, 0.0  ;;  %3218 = vmatprep.subr.bf16.mxu0 %v3341_v63 }
  0xf4   :  { %v402_v56 = vpop.f32.mrb[12].mxu1  ;;  %v2973_v4 = vpop.f32.mrb[15].mxu0 }
  0xf5   :  { %v343_v59 = vmax.f32 %v341_v52, 0.0  ;;  %v446_v60 = vadd.f32 %v445_v37, %v402_v56  ;;  %v2954_v61 = vpop.f32.mrb[13].mxu1  ;;  %v2225_v52 = vld [vmem:[%s4083_s3 + $0x60] sm:$0xff] }
  0xf6   :  { %v405_v1 = vpop.f32.mrb[14].mxu1  ;;  %3220 = vmatpush3.bf16.msra.mxu0 %v3219_v34 }
  0xf7   :  { %v345_v5 = vsel %vm287_vm3, %v343_v59, -inf  ;;  %v449_v14 = vadd.f32 %v448_v42, %v405_v1  ;;  %v2955_v6 = vpop.f32.mrb[15].mxu1  ;;  %3221 = vmatprep.subr.bf16.mxu0 %v3341_v63  ;;  %v2223_v42 = vld [vmem:[%s4083_s3 + $0x50] sm:$0xff]  ;;  %v2228_v59 = vld [vmem:[%s4083_s3 + $0x78] sm:$0xff] }
  0xf8   :  { %v346_v10 = vmax.f32 %v342_v0, %v345_v5  ;;  %v3222_v45 = vpack.c.bf16 %v2224_v43, %v2223_v42  ;;  %v3228_v6 = vpack.c.bf16 %v2228_v59, %v2227_v58 }
  0xf9   :  { %v666_v13 = vpop.f32.mrb[16].mxu0 }
  0xfa   :  { %v2984_v23 = vpop.f32.mrb[17].mxu0  ;;  %v347_v37 = vrot.slane %v346_v10, 4  ;;  %3223 = vmatpush3.bf16.msra.mxu0 %v3222_v45 }
  0xfb   :  { %v669_v19 = vpop.f32.mrb[18].mxu0  ;;  %3224 = vmatprep.subr.bf16.mxu0 %v3341_v63 }
  0xfc   :  { %v490_v3 = vpop.f32.mrb[16].mxu1  ;;  %v2985_v21 = vpop.f32.mrb[19].mxu0  ;;  %v348_v48 = vmax.f32 %v346_v10, %v347_v37 }
  0xfd   :  { %v497_v18 = vadd.f32 %v490_v3, %v446_v60  ;;  %v2966_v8 = vpop.f32.mrb[17].mxu1 }
  0xfe   :  { %v493_v20 = vpop.f32.mrb[18].mxu1  ;;  %v349_v1 = vrot.slane %v348_v48, 2 }
  0xff   :  { %v498_v22 = vadd.f32 %v493_v20, %v449_v14  ;;  %v554_v24 = vadd.f32 %v547_v53, %v497_v18  ;;  %v2967_v25 = vpop.f32.mrb[19].mxu1  ;;  %v2226_v53 = vld [vmem:[%s4083_s3 + $0x68] sm:$0xff] }
 0x100   :  { %v3225_v57 = vpack.c.bf16 %v2226_v53, %v2225_v52  ;;  %v350_v16 = vmax.f32 %v348_v48, %v349_v1 }
 0x101   :  { %v555_v28 = vadd.f32 %v550_v62, %v498_v22  ;;  %v754_v29 = vpop.f32.mrb[20].mxu0  ;;  %v2308_v22 = vld [vmem:[%s4085_s5 + $0x8] sm:$0xff] }
 0x102   :  { %v2996_v33 = vpop.f32.mrb[21].mxu0  ;;  %3226 = vmatpush3.bf16.msra.mxu0 %v3225_v57 }
 0x103   :  { %v757_v2 = vpop.f32.mrb[22].mxu0  ;;  %3227 = vmatprep.subr.bf16.mxu0 %v3341_v63 }
 0x104   :  { %v596_v32 = vpop.f32.mrb[20].mxu1  ;;  %v2997_v39 = vpop.f32.mrb[23].mxu0 }
 0x105   :  { %v603_v35 = vadd.f32 %v596_v32, %v554_v24  ;;  %v2978_v36 = vpop.f32.mrb[21].mxu1  ;;  %v351_v24 = vrot.slane %v350_v16, 1 }
 0x106   :  { %v599_v38 = vpop.f32.mrb[22].mxu1  ;;  %3229 = vmatpush3.bf16.msra.mxu0 %v3228_v6 }
 0x107   :  { %v604_v40 = vadd.f32 %v599_v38, %v555_v28  ;;  %v2979_v41 = vpop.f32.mrb[23].mxu1  ;;  %v605_v44 = vadd.f32 %v603_v35, %v3695_v46  ;;  %v352_v33 = vmax.f32 %v350_v16, %v351_v24 }
 0x109   :  { %v606_v47 = vadd.f32 %v604_v40, %v3700_v49  ;;  %v860_v51 = vpop.f32.mrb[24].mxu0  ;;  %v607_v54 = vmax.f32 %v605_v44, 0.0 }
 0x10a   :  { %v3008_v56 = vpop.f32.mrb[25].mxu0 }
 0x10b   :  { %v608_v50 = vmax.f32 %v606_v47, 0.0  ;;  %v863_v0 = vpop.f32.mrb[26].mxu0 }
 0x10c   :  { %v709_v55 = vpop.f32.mrb[24].mxu1  ;;  %v3009_v14 = vpop.f32.mrb[27].mxu0 }
 0x10d   :  { %v609_v60 = vsel %vm287_vm3, %v608_v50, -inf  ;;  %v710_v61 = vadd.f32 %v709_v55, %v666_v13  ;;  %v2990_v62 = vpop.f32.mrb[25].mxu1 }
 0x10e   :  { %v610_v4 = vmax.f32 %v607_v54, %v609_v60  ;;  %v712_v5 = vpop.f32.mrb[26].mxu1 }
 0x10f   :  { %v713_v7 = vadd.f32 %v712_v5, %v669_v19  ;;  %v761_v9 = vadd.f32 %v754_v29, %v710_v61  ;;  %v2991_v10 = vpop.f32.mrb[27].mxu1  ;;  %v2307_v19 = vld [vmem:[%s4085_s5] sm:$0xff] }
 0x110   :  { %v611_v11 = vrot.slane %v610_v4, 4  ;;  %v3231_v27 = vpack.c.bf16 %v2308_v22, %v2307_v19 }
 0x111   :  { %v762_v15 = vadd.f32 %v757_v2, %v713_v7  ;;  %v973_v23 = vpop.f32.mrb[28].mxu0 }
 0x112   :  { %v612_v3 = vmax.f32 %v610_v4, %v611_v11  ;;  %v3020_v18 = vpop.f32.mrb[29].mxu0  ;;  %3232 = vmatpush3.bf16.msra.mxu1 %v3231_v27 }
 0x113   :  { %v976_v21 = vpop.f32.mrb[30].mxu0  ;;  %3233 = vmatprep.subr.bf16.mxu1 %v3341_v63 }
 0x114   :  { %v613_v13 = vrot.slane %v612_v3, 2  ;;  %v811_v17 = vpop.f32.mrb[28].mxu1  ;;  %v3021_v26 = vpop.f32.mrb[31].mxu0 }
 0x115   :  { %v818_v8 = vadd.f32 %v811_v17, %v761_v9  ;;  %v3002_v20 = vpop.f32.mrb[29].mxu1 }
 0x116   :  { %v614_v25 = vmax.f32 %v612_v3, %v613_v13  ;;  %v814_v12 = vpop.f32.mrb[30].mxu1 }
 0x117   :  { %v819_v28 = vadd.f32 %v814_v12, %v762_v15  ;;  %v867_v29 = vadd.f32 %v860_v51, %v818_v8  ;;  %v3003_v30 = vpop.f32.mrb[31].mxu1 }
 0x118   :  { %v615_v31 = vrot.slane %v614_v25, 1 }
 0x119   :  { %v868_v32 = vadd.f32 %v863_v0, %v819_v28  ;;  %v869_v35 = vadd.f32 %v867_v29, %v3695_v46  ;;  %v1075_v2 = vpop.f32.mrb[32].mxu0 }
 0x11a   :  { %v616_v34 = vmax.f32 %v614_v25, %v615_v31  ;;  %v3032_v39 = vpop.f32.mrb[33].mxu0 }
 0x11b   :  { %v870_v36 = vadd.f32 %v868_v32, %v3700_v49  ;;  %v1078_v43 = vpop.f32.mrb[34].mxu0  ;;  %v871_v44 = vmax.f32 %v869_v35, 0.0 }
 0x11c   :  { %v2202_v37 = vsel %vm2201_vm5, %v352_v33, %v616_v34  ;;  %v930_v38 = vpop.f32.mrb[32].mxu1  ;;  %v3033_v47 = vpop.f32.mrb[35].mxu0 }
 0x11d   :  { %v872_v40 = vmax.f32 %v870_v36, 0.0  ;;  %v974_v41 = vadd.f32 %v973_v23, %v930_v38  ;;  %v3014_v42 = vpop.f32.mrb[33].mxu1 }
 0x11e   :  { %v933_v45 = vpop.f32.mrb[34].mxu1 }
 0x11f   :  { %v873_v48 = vsel %vm287_vm3, %v872_v40, -inf  ;;  %v977_v63 = vadd.f32 %v976_v21, %v933_v45  ;;  %v3015_v50 = vpop.f32.mrb[35].mxu1 }
 0x120   :  { %v874_v51 = vmax.f32 %v871_v44, %v873_v48 }
 0x121   :  { %v1194_v53 = vpop.f32.mrb[36].mxu0 }
 0x122   :  { %v875_v52 = vrot.slane %v874_v51, 4  ;;  %v3044_v56 = vpop.f32.mrb[37].mxu0 }
 0x123   :  { %v1197_v59 = vpop.f32.mrb[38].mxu0 }
 0x124   :  { %v876_v54 = vmax.f32 %v874_v51, %v875_v52  ;;  %v1018_v55 = vpop.f32.mrb[36].mxu1  ;;  %v3045_v62 = vpop.f32.mrb[39].mxu0 }
 0x125   :  { %v1025_v57 = vadd.f32 %v1018_v55, %v974_v41  ;;  %v3026_v58 = vpop.f32.mrb[37].mxu1 }
 0x126   :  { %v877_v60 = vrot.slane %v876_v54, 2  ;;  %v1021_v61 = vpop.f32.mrb[38].mxu1 }
 0x127   :  { %v1026_v0 = vadd.f32 %v1021_v61, %v977_v63  ;;  %v1082_v1 = vadd.f32 %v1075_v2, %v1025_v57  ;;  %v3027_v4 = vpop.f32.mrb[39].mxu1 }
 0x128   :  { %v878_v5 = vmax.f32 %v876_v54, %v877_v60 }
 0x129   :  { %v1083_v14 = vadd.f32 %v1078_v43, %v1026_v0  ;;  %v1282_v7 = vpop.f32.mrb[40].mxu0 }
 0x12a   :  { %v879_v6 = vrot.slane %v878_v5, 1  ;;  %v3056_v11 = vpop.f32.mrb[41].mxu0 }
 0x12b   :  { %v1285_v3 = vpop.f32.mrb[42].mxu0 }
 0x12c   :  { %v880_v9 = vmax.f32 %v878_v5, %v879_v6  ;;  %v1124_v10 = vpop.f32.mrb[40].mxu1  ;;  %v3057_v13 = vpop.f32.mrb[43].mxu0 }
 0x12d   :  { %v1131_v15 = vadd.f32 %v1124_v10, %v1082_v1  ;;  %v3038_v16 = vpop.f32.mrb[41].mxu1 }
 0x12e   :  { %v1127_v23 = vpop.f32.mrb[42].mxu1  ;;  %v2203_v17 = vsel %vm79_vm0, %v2202_v37, %v880_v9 }
 0x12f   :  { %v1132_v18 = vadd.f32 %v1127_v23, %v1083_v14  ;;  %v3039_v8 = vpop.f32.mrb[43].mxu1  ;;  %v1133_v20 = vadd.f32 %v1131_v15, %v3695_v46 }
 0x131   :  { %v1134_v21 = vadd.f32 %v1132_v18, %v3700_v49  ;;  %v1388_v22 = vpop.f32.mrb[44].mxu0  ;;  %v1135_v24 = vmax.f32 %v1133_v20, 0.0 }
 0x132   :  { %v3068_v12 = vpop.f32.mrb[45].mxu0 }
 0x133   :  { %v1136_v19 = vmax.f32 %v1134_v21, 0.0  ;;  %v1391_v29 = vpop.f32.mrb[46].mxu0 }
 0x134   :  { %v1237_v25 = vpop.f32.mrb[44].mxu1  ;;  %v3069_v32 = vpop.f32.mrb[47].mxu0 }
 0x135   :  { %v1137_v26 = vsel %vm287_vm3, %v1136_v19, -inf  ;;  %v1238_v27 = vadd.f32 %v1237_v25, %v1194_v53  ;;  %v3050_v28 = vpop.f32.mrb[45].mxu1 }
 0x136   :  { %v1138_v30 = vmax.f32 %v1135_v24, %v1137_v26  ;;  %v1240_v31 = vpop.f32.mrb[46].mxu1 }
 0x137   :  { %v1241_v33 = vadd.f32 %v1240_v31, %v1197_v59  ;;  %v1289_v34 = vadd.f32 %v1282_v7, %v1238_v27  ;;  %v3051_v35 = vpop.f32.mrb[47].mxu1 }
 0x138   :  { %v1139_v36 = vrot.slane %v1138_v30, 4 }
 0x139   :  { %v1290_v2 = vadd.f32 %v1285_v3, %v1241_v33  ;;  %v1501_v38 = vpop.f32.mrb[48].mxu0 }
 0x13a   :  { %v1140_v37 = vmax.f32 %v1138_v30, %v1139_v36  ;;  %v3080_v41 = vpop.f32.mrb[49].mxu0 }
 0x13b   :  { %v1504_v44 = vpop.f32.mrb[50].mxu0 }
 0x13c   :  { %v1141_v39 = vrot.slane %v1140_v37, 2  ;;  %v1339_v40 = vpop.f32.mrb[48].mxu1  ;;  %v3081_v48 = vpop.f32.mrb[51].mxu0 }
 0x13d   :  { %v1346_v42 = vadd.f32 %v1339_v40, %v1289_v34  ;;  %v3062_v43 = vpop.f32.mrb[49].mxu1 }
 0x13e   :  { %v1142_v45 = vmax.f32 %v1140_v37, %v1141_v39  ;;  %v1342_v47 = vpop.f32.mrb[50].mxu1 }
 0x13f   :  { %v1347_v63 = vadd.f32 %v1342_v47, %v1290_v2  ;;  %v1395_v50 = vadd.f32 %v1388_v22, %v1346_v42  ;;  %v3063_v51 = vpop.f32.mrb[51].mxu1 }
 0x140   :  { %v1143_v52 = vrot.slane %v1142_v45, 1 }
 0x141   :  { %v1396_v53 = vadd.f32 %v1391_v29, %v1347_v63  ;;  %v1397_v55 = vadd.f32 %v1395_v50, %v3695_v46  ;;  %v1603_v57 = vpop.f32.mrb[52].mxu0 }
 0x142   :  { %v1144_v54 = vmax.f32 %v1142_v45, %v1143_v52  ;;  %v3092_v59 = vpop.f32.mrb[53].mxu0 }
 0x143   :  { %v1398_v56 = vadd.f32 %v1396_v53, %v3700_v49  ;;  %v1606_v1 = vpop.f32.mrb[54].mxu0  ;;  %v1399_v4 = vmax.f32 %v1397_v55, 0.0 }
 0x144   :  { %v1458_v58 = vpop.f32.mrb[52].mxu1  ;;  %v2205_v60 = vsel %vm2204_vm6, %v2203_v17, %v1144_v54  ;;  %v3093_v14 = vpop.f32.mrb[55].mxu0 }
 0x145   :  { %v1400_v61 = vmax.f32 %v1398_v56, 0.0  ;;  %v1502_v62 = vadd.f32 %v1501_v38, %v1458_v58  ;;  %v3074_v0 = vpop.f32.mrb[53].mxu1 }
 0x146   :  { %v1461_v5 = vpop.f32.mrb[54].mxu1 }
 0x147   :  { %v1401_v6 = vsel %vm287_vm3, %v1400_v61, -inf  ;;  %v1505_v7 = vadd.f32 %v1504_v44, %v1461_v5  ;;  %v3075_v9 = vpop.f32.mrb[55].mxu1 }
 0x148   :  { %v1402_v10 = vmax.f32 %v1399_v4, %v1401_v6 }
 0x149   :  { %v1722_v15 = vpop.f32.mrb[56].mxu0 }
 0x14a   :  { %v1403_v11 = vrot.slane %v1402_v10, 4  ;;  %v3104_v23 = vpop.f32.mrb[57].mxu0 }
 0x14b   :  { %v1725_v17 = vpop.f32.mrb[58].mxu0 }
 0x14c   :  { %v1404_v16 = vmax.f32 %v1402_v10, %v1403_v11  ;;  %v1546_v3 = vpop.f32.mrb[56].mxu1  ;;  %v3105_v21 = vpop.f32.mrb[59].mxu0 }
 0x14d   :  { %v1553_v13 = vadd.f32 %v1546_v3, %v1502_v62  ;;  %v3086_v18 = vpop.f32.mrb[57].mxu1 }
 0x14e   :  { %v1405_v8 = vrot.slane %v1404_v16, 2  ;;  %v1549_v20 = vpop.f32.mrb[58].mxu1 }
 0x14f   :  { %v1554_v19 = vadd.f32 %v1549_v20, %v1505_v7  ;;  %v1610_v22 = vadd.f32 %v1603_v57, %v1553_v13  ;;  %v3087_v24 = vpop.f32.mrb[59].mxu1 }
 0x150   :  { %v1406_v25 = vmax.f32 %v1404_v16, %v1405_v8 }
 0x151   :  { %v1611_v12 = vadd.f32 %v1606_v1, %v1554_v19  ;;  %v1810_v27 = vpop.f32.mrb[60].mxu0 }
 0x152   :  { %v1407_v26 = vrot.slane %v1406_v25, 1  ;;  %v3116_v30 = vpop.f32.mrb[61].mxu0 }
 0x153   :  { %v1813_v33 = vpop.f32.mrb[62].mxu0 }
 0x154   :  { %v1408_v28 = vmax.f32 %v1406_v25, %v1407_v26  ;;  %v1652_v29 = vpop.f32.mrb[60].mxu1  ;;  %v3117_v35 = vpop.f32.mrb[63].mxu0 }
 0x155   :  { %v1659_v31 = vadd.f32 %v1652_v29, %v1610_v22  ;;  %v3098_v32 = vpop.f32.mrb[61].mxu1 }
 0x156   :  { %v1655_v34 = vpop.f32.mrb[62].mxu1  ;;  %v2207_v36 = vsel %vm2206_vm7, %v2205_v60, %v1408_v28 }
 0x157   :  { %v1660_v2 = vadd.f32 %v1655_v34, %v1611_v12  ;;  %v3099_v37 = vpop.f32.mrb[63].mxu1  ;;  %v1661_v38 = vadd.f32 %v1659_v31, %v3695_v46 }
 0x159   :  { %v1662_v39 = vadd.f32 %v1660_v2, %v3700_v49  ;;  %v1916_v41 = vpop.f32.mrb[64].mxu0  ;;  %v1663_v42 = vmax.f32 %v1661_v38, 0.0 }
 0x15a   :  { %v3128_v44 = vpop.f32.mrb[65].mxu0 }
 0x15b   :  { %v1664_v40 = vmax.f32 %v1662_v39, 0.0  ;;  %v1919_v63 = vpop.f32.mrb[66].mxu0 }
 0x15c   :  { %v1765_v43 = vpop.f32.mrb[64].mxu1  ;;  %v3129_v52 = vpop.f32.mrb[67].mxu0 }
 0x15d   :  { %v1665_v45 = vsel %vm287_vm3, %v1664_v40, -inf  ;;  %v1766_v47 = vadd.f32 %v1765_v43, %v1722_v15  ;;  %v3110_v48 = vpop.f32.mrb[65].mxu1 }
 0x15e   :  { %v1666_v50 = vmax.f32 %v1663_v42, %v1665_v45  ;;  %v1768_v51 = vpop.f32.mrb[66].mxu1 }
 0x15f   :  { %v1769_v53 = vadd.f32 %v1768_v51, %v1725_v17  ;;  %v1817_v54 = vadd.f32 %v1810_v27, %v1766_v47  ;;  %v3111_v55 = vpop.f32.mrb[67].mxu1 }
 0x160   :  { %v1667_v56 = vrot.slane %v1666_v50, 4 }
 0x161   :  { %v1818_v57 = vadd.f32 %v1813_v33, %v1769_v53  ;;  %v2029_v59 = vpop.f32.mrb[68].mxu0 }
 0x162   :  { %v1668_v58 = vmax.f32 %v1666_v50, %v1667_v56  ;;  %v3140_v62 = vpop.f32.mrb[69].mxu0 }
 0x163   :  { %v2032_v4 = vpop.f32.mrb[70].mxu0 }
 0x164   :  { %v1669_v60 = vrot.slane %v1668_v58, 2  ;;  %v1867_v61 = vpop.f32.mrb[68].mxu1  ;;  %v3141_v6 = vpop.f32.mrb[71].mxu0 }
 0x165   :  { %v1874_v0 = vadd.f32 %v1867_v61, %v1817_v54  ;;  %v3122_v1 = vpop.f32.mrb[69].mxu1 }
 0x166   :  { %v1670_v5 = vmax.f32 %v1668_v58, %v1669_v60  ;;  %v1870_v14 = vpop.f32.mrb[70].mxu1 }
 0x167   :  { %v1875_v7 = vadd.f32 %v1870_v14, %v1818_v57  ;;  %v1923_v9 = vadd.f32 %v1916_v41, %v1874_v0  ;;  %v3123_v10 = vpop.f32.mrb[71].mxu1 }
 0x168   :  { %v1671_v11 = vrot.slane %v1670_v5, 1 }
 0x169   :  { %v1924_v15 = vadd.f32 %v1919_v63, %v1875_v7  ;;  %v1925_v3 = vadd.f32 %v1923_v9, %v3695_v46  ;;  %v2131_v13 = vpop.f32.mrb[72].mxu0  ;;  %v2816_v9 = vld [vmem:[%s4086_s6] ss:$0 sm:$0xff] }
 0x16a   :  { %v1672_v16 = vmax.f32 %v1670_v5, %v1671_v11  ;;  %v3152_v17 = vpop.f32.mrb[73].mxu0 }
 0x16b   :  { %v1926_v23 = vadd.f32 %v1924_v15, %v3700_v49  ;;  %v2134_v22 = vpop.f32.mrb[74].mxu0  ;;  %v1927_v24 = vmax.f32 %v1925_v3, 0.0  ;;  %v2551_v17 = vld [vmem:[%s4087_s7 + $0x8] sm:$0xff] }
 0x16c   :  { %v1986_v18 = vpop.f32.mrb[72].mxu1  ;;  %v2209_v8 = vsel %vm2208_vm8, %v2207_v36, %v1672_v16  ;;  %v3153_v12 = vpop.f32.mrb[75].mxu0 }
 0x16d   :  { %v1928_v20 = vmax.f32 %v1926_v23, 0.0  ;;  %v2030_v21 = vadd.f32 %v2029_v59, %v1986_v18  ;;  %v3134_v19 = vpop.f32.mrb[73].mxu1  ;;  %v2554_v12 = vld [vmem:[%s4087_s7 + $0x20] sm:$0xff] }
 0x16e   :  { %v1989_v25 = vpop.f32.mrb[74].mxu1 }
 0x16f   :  { %v1929_v26 = vsel %vm287_vm3, %v1928_v20, -inf  ;;  %v2033_v27 = vadd.f32 %v2032_v4, %v1989_v25  ;;  %v3135_v28 = vpop.f32.mrb[75].mxu1  ;;  %v2815_v4 = vld [vmem:[%s4084_s4] ss:$0 sm:$0xff]  ;;  %v2552_v20 = vld [vmem:[%s4087_s7 + $0x10] sm:$0xff] }
 0x170   :  { %v1930_v29 = vmax.f32 %v1927_v24, %v1929_v26 }
 0x172   :  { %v1931_v30 = vrot.slane %v1930_v29, 4 }
 0x174   :  { %v1932_v31 = vmax.f32 %v1930_v29, %v1931_v30  ;;  %v2074_v32 = vpop.f32.mrb[76].mxu1  ;;  %v2555_v29 = vld [vmem:[%s4087_s7 + $0x28] sm:$0xff] }
 0x175   :  { %v2081_v33 = vadd.f32 %v2074_v32, %v2030_v21  ;;  %v3146_v34 = vpop.f32.mrb[77].mxu1 }
 0x176   :  { %v1933_v35 = vrot.slane %v1932_v31, 2  ;;  %v2077_v2 = vpop.f32.mrb[78].mxu1  ;;  %v2556_v34 = vld [vmem:[%s4087_s7 + $0x30] sm:$0xff] }
 0x177   :  { %v2082_v36 = vadd.f32 %v2077_v2, %v2033_v27  ;;  %v2138_v37 = vadd.f32 %v2131_v13, %v2081_v33  ;;  %v3147_v38 = vpop.f32.mrb[79].mxu1 }
 0x178   :  { %v1934_v39 = vmax.f32 %v1932_v31, %v1933_v35  ;;  %v2557_v38 = vld [vmem:[%s4087_s7 + $0x38] sm:$0xff] }
 0x179   :  { %v2139_v40 = vadd.f32 %v2134_v22, %v2082_v36  ;;  %v2553_v22 = vld [vmem:[%s4087_s7 + $0x18] sm:$0xff] }
 0x17a   :  { %v1935_v41 = vrot.slane %v1934_v39, 1 }
 0x17c   :  { %v2180_v42 = vpop.f32.mrb[80].mxu1  ;;  %v1936_v43 = vmax.f32 %v1934_v39, %v1935_v41 }
 0x17d   :  { %v2187_v44 = vadd.f32 %v2180_v42, %v2138_v37  ;;  %v3158_v45 = vpop.f32.mrb[81].mxu1  ;;  %v2558_v42 = vld [vmem:[%s4087_s7 + $0x40] sm:$0xff] }
 0x17e   :  { %v2183_v47 = vpop.f32.mrb[82].mxu1  ;;  %v2210_v48 = vsel %vm287_vm3, %v2209_v8, %v1936_v43  ;;  %v2550_v8 = vld [vmem:[%s4087_s7] sm:$0xff] }
 0x17f   :  { %v2188_v63 = vadd.f32 %v2183_v47, %v2139_v40  ;;  %v3159_v50 = vpop.f32.mrb[83].mxu1  ;;  %v2189_v51 = vadd.f32 %v2187_v44, %v3695_v46  ;;  %v2309_v46 = vld [vmem:[%s4085_s5 + $0x10] sm:$0xff] }
 0x181   :  { %v2190_v52 = vadd.f32 %v2188_v63, %v3700_v49  ;;  %v2191_v54 = vmax.f32 %v2189_v51, 0.0  ;;  %v2310_v49 = vld [vmem:[%s4085_s5 + $0x18] sm:$0xff] }
 0x182   :  { %v3234_v1 = vpack.c.bf16 %v2310_v49, %v2309_v46 }
 0x183   :  { %v2192_v53 = vmax.f32 %v2190_v52, 0.0 }
 0x184   :  { %3235 = vmatpush3.bf16.msra.mxu1 %v3234_v1 }
 0x185   :  { %v2193_v55 = vsel %vm287_vm3, %v2192_v53, -inf }
 0x186   :  { %v2194_v56 = vmax.f32 %v2191_v54, %v2193_v55 }
 0x188   :  { %v2195_v57 = vrot.slane %v2194_v56, 4 }
 0x18a   :  { %v2196_v58 = vmax.f32 %v2194_v56, %v2195_v57  ;;  %v2560_v56 = vld [vmem:[%s4087_s7 + $0x50] sm:$0xff] }
 0x18c   :  { %v2197_v59 = vrot.slane %v2196_v58, 2 }
 0x18e   :  { %v2198_v60 = vmax.f32 %v2196_v58, %v2197_v59 }
 0x190   :  { %v2199_v61 = vrot.slane %v2198_v60, 1 }
 0x192   :  { %v2200_v62 = vmax.f32 %v2198_v60, %v2199_v61 }
 0x194   :  { %v2212_v0 = vsel %vm2211_vm9, %v2210_v48, %v2200_v62  ;;  %v2559_v48 = vld [vmem:[%s4087_s7 + $0x48] sm:$0xff] }
 0x195   :  { %3193 = vmatmul.mubr.f32.vlgmr.msra.gmra.mrb[76].mxu0 %v2212_v0  ;;  %v2561_v0 = vld [vmem:[%s4087_s7 + $0x58] sm:$0xff] }
 0x268   :  { %v2302_v5 = vpop.f32.mrb[76].mxu0 }
 0x269   :  { %v2303_v14 = vadd.f32 %v2815_v4, %v2302_v5  ;;  %v3194_v6 = vpop.f32.mrb[77].mxu0 }
 0x26b   :  { %v2306_v7 = vmax.f32 %v2303_v14, 0.0  ;;  %v2562_v14 = vld [vmem:[%s4087_s7 + $0x60] sm:$0xff] }
 0x26d   :  { %3204 = vmatmul.mubr.msk.f32.vlgmr.msra.gmra.mrb[84].mxu1 %vm2318_vm10, %v2306_v7 }
 0x340   :  { %v2388_v10 = vpop.f32.mrb[84].mxu1 }
 0x341   :  { %v3205_v11 = vpop.f32.mrb[85].mxu1  ;;  %v2389_v15 = vadd.f32 %v2816_v9, %v2388_v10 }
 0x342   :  { %v2563_v11 = vld [vmem:[%s4087_s7 + $0x68] sm:$0xff] }
 0x343   :  { %2392 = vxpose.xlu0.b32.start.end [1/1] (short) %v2389_v15, 128 }
 0x3c3   :  { %v3804_v16 = vpop.trf.xlu0 }
 0x3c4   :  { %v2566_v24 = vmul.f32 %v2550_v8, %v3804_v16 }
 0x3c6   :  { %v2582_v30 = vsel %vm2424_vm11, %v2566_v24, 0.0  ;;  %v2425_v24 = vsel %vm2424_vm11, %v3804_v16, -inf }
 0x3c7   :  { %v3806_v3 = vpop.trf.xlu0 }
 0x3c8   :  { %v2567_v19 = vmul.f32 %v2551_v17, %v3806_v3 }
 0x3ca   :  { %v2583_v27 = vsel %vm2424_vm11, %v2567_v19, 0.0 }
 0x3cb   :  { %v3808_v23 = vpop.trf.xlu0  ;;  %v2584_v33 = vadd.f32 %v2583_v27, %v2582_v30 }
 0x3cc   :  { %v2568_v25 = vmul.f32 %v2552_v20, %v3808_v23 }
 0x3ce   :  { %v2585_v31 = vsel %vm2424_vm11, %v2568_v25, 0.0  ;;  %v2426_v25 = vsel %vm2424_vm11, %v3806_v3, -inf }
 0x3cf   :  { %v3810_v13 = vpop.trf.xlu0  ;;  %v2586_v37 = vadd.f32 %v2585_v31, %v2584_v33 }
 0x3d0   :  { %v2569_v28 = vmul.f32 %v2553_v22, %v3810_v13  ;;  %v2428_v27 = vsel %vm2424_vm11, %v3810_v13, -inf }
 0x3d2   :  { %v2587_v2 = vsel %vm2424_vm11, %v2569_v28, 0.0  ;;  %v2564_v28 = vld [vmem:[%s4087_s7 + $0x70] sm:$0xff] }
 0x3d3   :  { %v3812_v18 = vpop.trf.xlu0  ;;  %v2588_v41 = vadd.f32 %v2587_v2, %v2586_v37 }
 0x3d4   :  { %v2570_v32 = vmul.f32 %v2554_v12, %v3812_v18  ;;  %v2429_v20 = vsel %vm2424_vm11, %v3812_v18, -inf  ;;  %v2427_v12 = vsel %vm2424_vm11, %v3808_v23, -inf }
 0x3d5   :  { %v2430_v33 = vmax.f32 %v2425_v24, %v2429_v20 }
 0x3d6   :  { %v2589_v39 = vsel %vm2424_vm11, %v2570_v32, 0.0 }
 0x3d7   :  { %v3823_v21 = vpop.trf.xlu0  ;;  %v2590_v47 = vadd.f32 %v2589_v39, %v2588_v41 }
 0x3d8   :  { %v2571_v36 = vmul.f32 %v2555_v29, %v3823_v21  ;;  %v2431_v19 = vsel %vm2424_vm11, %v3823_v21, -inf }
 0x3da   :  { %v2591_v44 = vsel %vm2424_vm11, %v2571_v36, 0.0 }
 0x3db   :  { %v3834_v26 = vpop.trf.xlu0  ;;  %v2592_v51 = vadd.f32 %v2591_v44, %v2590_v47  ;;  %v2565_v47 = vld [vmem:[%s4087_s7 + $0x78] sm:$0xff]  ;;  %s3342_s7 = smov [#allocation4]  }
 0x3dc   :  { %v2572_v40 = vmul.f32 %v2556_v34, %v3834_v26  ;;  %v2433_v29 = vsel %vm2424_vm11, %v3834_v26, -inf  ;;  %v2432_v34 = vmax.f32 %v2426_v25, %v2431_v19  ;;  %s2743_s0 = sshll.u32 %s3342_s7, 4  ;;  %s2744_s0 = int_to_ptr.vmem [resolvable:$true] %s2743_s0 }
 0x3dd   :  { %s3291_s28 = scalar_lea.vmem %s2744_s0, 16  ;;  %s3295_s29 = scalar_lea.vmem %s2744_s0, 32 }
 0x3de   :  { %v2593_v63 = vsel %vm2424_vm11, %v2572_v40, 0.0  ;;  %p3292_p0 = scmp.ne.s32.totalorder %s2744_s0, %s3291_s28  ;;  %p3296_p1 = scmp.lt.s32.totalorder %s2744_s0, %s2744_s0 }
 0x3df   :  { %v3847_v35 = vpop.trf.xlu0  ;;  %v2594_v55 = vadd.f32 %v2593_v63, %v2592_v51  ;;  %p3297_p2 = scmp.lt.s32.totalorder %s3295_s29, %s3291_s28 }
 0x3e0   :  { %v2573_v45 = vmul.f32 %v2557_v38, %v3847_v35  ;;  %v2435_v30 = vsel %vm2424_vm11, %v3847_v35, -inf }
 0x3e1   :  { %v2436_v44 = vmax.f32 %v2428_v27, %v2435_v30  ;;  %p3298_p3 = por %p3297_p2, %p3296_p1 }
 0x3e2   :  { %v2595_v53 = vsel %vm2424_vm11, %v2573_v45, 0.0 }
 0x3e3   :  { %v3859_v43 = vpop.trf.xlu0  ;;  %v2596_v58 = vadd.f32 %v2595_v53, %v2594_v55  ;;  %p3299_p4 = pnand %p3298_p3, %p3292_p0 }
 0x3e4   :  { %v2574_v50 = vmul.f32 %v2558_v42, %v3859_v43  ;;  %v2437_v2 = vsel %vm2424_vm11, %v3859_v43, -inf  ;;  %v2434_v42 = vmax.f32 %v2427_v12, %v2433_v29 }
 0x3e6   :  { %v2597_v57 = vsel %vm2424_vm11, %v2574_v50, 0.0 }
 0x3e7   :  { %v3868_v52 = vpop.trf.xlu0  ;;  %v2598_v62 = vadd.f32 %v2597_v57, %v2596_v58 }
 0x3e8   :  { %v2575_v54 = vmul.f32 %v2559_v48, %v3868_v52  ;;  %v2439_v31 = vsel %vm2424_vm11, %v3868_v52, -inf  ;;  %v2438_v48 = vmax.f32 %v2430_v33, %v2437_v2 }
 0x3e9   :  { %v2440_v45 = vmax.f32 %v2432_v34, %v2439_v31 }
 0x3ea   :  { %v2599_v60 = vsel %vm2424_vm11, %v2575_v54, 0.0 }
 0x3eb   :  { %v3876_v59 = vpop.trf.xlu0  ;;  %v2600_v49 = vadd.f32 %v2599_v60, %v2598_v62 }
 0x3ec   :  { %v2576_v61 = vmul.f32 %v2560_v56, %v3876_v59  ;;  %v2441_v38 = vsel %vm2424_vm11, %v3876_v59, -inf }
 0x3ed   :  { %v2442_v53 = vmax.f32 %v2434_v42, %v2441_v38 }
 0x3ee   :  { %v2601_v46 = vsel %vm2424_vm11, %v2576_v61, 0.0 }
 0x3ef   :  { %v3884_v1 = vpop.trf.xlu0  ;;  %v2602_v5 = vadd.f32 %v2601_v46, %v2600_v49 }
 0x3f0   :  { %v2577_v4 = vmul.f32 %v2561_v0, %v3884_v1  ;;  %v2443_v39 = vsel %vm2424_vm11, %v3884_v1, -inf }
 0x3f1   :  { %v2444_v55 = vmax.f32 %v2436_v44, %v2443_v39 }
 0x3f2   :  { %v2603_v6 = vsel %vm2424_vm11, %v2577_v4, 0.0 }
 0x3f3   :  { %v2604_v7 = vadd.f32 %v2603_v6, %v2602_v5  ;;  %v3891_v9 = vpop.trf.xlu0 }
 0x3f4   :  { %v2578_v10 = vmul.f32 %v2562_v14, %v3891_v9  ;;  %v2445_v63 = vsel %vm2424_vm11, %v3891_v9, -inf }
 0x3f5   :  { %v2446_v61 = vmax.f32 %v2438_v48, %v2445_v63 }
 0x3f6   :  { %v2605_v15 = vsel %vm2424_vm11, %v2578_v10, 0.0 }
 0x3f7   :  { %v2606_v17 = vadd.f32 %v2605_v15, %v2604_v7  ;;  %v3898_v8 = vpop.trf.xlu0  ;;  %v2622_v7 = vlaneseq }
 0x3f8   :  { %v2579_v22 = vmul.f32 %v2563_v11, %v3898_v8  ;;  %v2447_v40 = vsel %vm2424_vm11, %v3898_v8, -inf }
 0x3f9   :  { %v2448_v54 = vmax.f32 %v2440_v45, %v2447_v40  ;;  %v2623_v15 = vshrl.u32 %v2622_v7, 7 }
 0x3fa   :  { %v2607_v32 = vsel %vm2424_vm11, %v2579_v22, 0.0 }
 0x3fb   :  { %v2608_v36 = vadd.f32 %v2607_v32, %v2606_v17  ;;  %v3925_v37 = vpop.trf.xlu0  ;;  %v2453_v49 = vmax.f32 %v2446_v61, %v2448_v54  ;;  %v2624_v19 = vadd.s32 8, %v2623_v15  ;;  %v2625_v22 = vadd.s32 16, %v2623_v15 }
 0x3fc   :  { %v2580_v41 = vmul.f32 %v2564_v28, %v3925_v37  ;;  %v2449_v50 = vsel %vm2424_vm11, %v3925_v37, -inf  ;;  %v2626_v24 = vadd.s32 24, %v2623_v15  ;;  %v2627_v25 = vadd.s32 32, %v2623_v15 }
 0x3fd   :  { %v2450_v62 = vmax.f32 %v2442_v53, %v2449_v50  ;;  %v2628_v12 = vadd.s32 40, %v2623_v15  ;;  %v2629_v27 = vadd.s32 48, %v2623_v15  ;;  %v2630_v29 = vadd.s32 56, %v2623_v15 }
 0x3fe   :  { %v2609_v51 = vsel %vm2424_vm11, %v2580_v41, 0.0  ;;  %v2631_v30 = vadd.s32 64, %v2623_v15  ;;  %v2632_v31 = vadd.s32 72, %v2623_v15  ;;  %v2633_v32 = vadd.s32 80, %v2623_v15 }
 0x3ff   :  { %v2610_v56 = vadd.f32 %v2609_v51, %v2608_v36  ;;  %v3942_v57 = vpop.trf.xlu0  ;;  %v2634_v33 = vadd.s32 88, %v2623_v15  ;;  %v2635_v34 = vadd.s32 96, %v2623_v15  ;;  %v2636_v2 = vadd.s32 104, %v2623_v15 }
 0x400   :  { %v2451_v58 = vsel %vm2424_vm11, %v3942_v57, -inf  ;;  %v2581_v60 = vmul.f32 %v2565_v47, %v3942_v57  ;;  %v2637_v36 = vadd.s32 112, %v2623_v15  ;;  %v2638_v38 = vadd.s32 120, %v2623_v15 }
 0x401   :  { %v2452_v0 = vmax.f32 %v2444_v55, %v2451_v58 }
 0x402   :  { %v2611_v46 = vsel %vm2424_vm11, %v2581_v60, 0.0 }
 0x403   :  { %v2454_v4 = vmax.f32 %v2450_v62, %v2452_v0  ;;  %v3948_v5 = vadd.f32 %v2611_v46, %v2610_v56 }
 0x405   :  { %v2455_v14 = vmax.f32 %v2453_v49, %v2454_v4 }
 0x407   :  { %v2456_v6 = vrot.slane %v2455_v14, 4 }
 0x409   :  { %v2457_v10 = vmax.f32 %v2455_v14, %v2456_v6 }
 0x40b   :  { %v2458_v11 = vrot.slane %v2457_v10, 2 }
 0x40d   :  { %v2459_v17 = vmax.f32 %v2457_v10, %v2458_v11 }
 0x40f   :  { %v2460_v20 = vrot.slane %v2459_v17, 1 }
 0x411   :  { %v3950_v28 = vmax.f32 %v2459_v17, %v2460_v20 }
 0x413   :  { %vm2639_vm12 = vcmp.eq.f32.partialorder %v3804_v16, %v3950_v28  ;;  %vm2640_vm13 = vcmp.eq.f32.partialorder %v3806_v3, %v3950_v28  ;;  %vm2641_vm14 = vcmp.eq.f32.partialorder %v3808_v23, %v3950_v28  ;;  %vm2642_vm15 = vcmp.eq.f32.partialorder %v3810_v13, %v3950_v28 }
 0x414   :  { %vm2643_vm0 = vcmp.eq.f32.partialorder %v3812_v18, %v3950_v28  ;;  %vm2644_vm1 = vcmp.eq.f32.partialorder %v3823_v21, %v3950_v28  ;;  %vm2645_vm2 = vcmp.eq.f32.partialorder %v3834_v26, %v3950_v28  ;;  %vm2646_vm3 = vcmp.eq.f32.partialorder %v3847_v35, %v3950_v28 }
 0x415   :  { %vm2647_vm4 = vcmp.eq.f32.partialorder %v3859_v43, %v3950_v28  ;;  %vm2648_vm5 = vcmp.eq.f32.partialorder %v3868_v52, %v3950_v28  ;;  %vm2649_vm6 = vcmp.eq.f32.partialorder %v3876_v59, %v3950_v28  ;;  %vm2650_vm7 = vcmp.eq.f32.partialorder %v3884_v1, %v3950_v28 }
 0x416   :  { %vm2651_vm8 = vcmp.eq.f32.partialorder %v3891_v9, %v3950_v28  ;;  %vm2652_vm9 = vcmp.eq.f32.partialorder %v3898_v8, %v3950_v28  ;;  %vm2653_vm10 = vcmp.eq.f32.partialorder %v3925_v37, %v3950_v28  ;;  %v2655_v39 = vsel %vm2639_vm12, %v2623_v15, 128 }
 0x417   :  { %v2656_v40 = vsel %vm2640_vm13, %v2624_v19, 128  ;;  %v2657_v41 = vsel %vm2641_vm14, %v2625_v22, 128  ;;  %v2658_v42 = vsel %vm2642_vm15, %v2626_v24, 128  ;;  %v2659_v44 = vsel %vm2643_vm0, %v2627_v25, 128 }
 0x418   :  { %v2660_v45 = vsel %vm2644_vm1, %v2628_v12, 128  ;;  %v2661_v47 = vsel %vm2645_vm2, %v2629_v27, 128  ;;  %v2662_v48 = vsel %vm2646_vm3, %v2630_v29, 128  ;;  %v2663_v63 = vsel %vm2647_vm4, %v2631_v30, 128 }
 0x419   :  { %v2664_v50 = vsel %vm2648_vm5, %v2632_v31, 128  ;;  %v2665_v51 = vsel %vm2649_vm6, %v2633_v32, 128  ;;  %v2666_v53 = vsel %vm2650_vm7, %v2634_v33, 128  ;;  %v2667_v54 = vsel %vm2651_vm8, %v2635_v34, 128 }
 0x41a   :  { %v2668_v55 = vsel %vm2652_vm9, %v2636_v2, 128  ;;  %v2669_v56 = vsel %vm2653_vm10, %v2637_v36, 128  ;;  %v2671_v58 = vsel %vm2424_vm11, %v2655_v39, 2147483647  ;;  %v2672_v60 = vsel %vm2424_vm11, %v2656_v40, 2147483647 }
 0x41b   :  { %v2673_v61 = vsel %vm2424_vm11, %v2657_v41, 2147483647  ;;  %v2674_v62 = vsel %vm2424_vm11, %v2658_v42, 2147483647  ;;  %vm2654_vm12 = vcmp.eq.f32.partialorder %v3942_v57, %v3950_v28  ;;  %v2675_v0 = vsel %vm2424_vm11, %v2659_v44, 2147483647 }
 0x41c   :  { %v2678_v46 = vsel %vm2424_vm11, %v2660_v45, 2147483647  ;;  %v2681_v49 = vsel %vm2424_vm11, %v2661_v47, 2147483647  ;;  %vm2676_vm13 = vcmp.lt.s32.totalorder %v2671_v58, %v2675_v0  ;;  %v2684_v4 = vsel %vm2424_vm11, %v2662_v48, 2147483647 }
 0x41d   :  { %vm2679_vm14 = vcmp.lt.s32.totalorder %v2672_v60, %v2678_v46  ;;  %vm2682_vm15 = vcmp.lt.s32.totalorder %v2673_v61, %v2681_v49  ;;  %v2677_v14 = vsel %vm2676_vm13, %v2671_v58, %v2675_v0  ;;  %vm2685_vm0 = vcmp.lt.s32.totalorder %v2674_v62, %v2684_v4 }
 0x41e   :  { %v2680_v6 = vsel %vm2679_vm14, %v2672_v60, %v2678_v46  ;;  %v2683_v7 = vsel %vm2682_vm15, %v2673_v61, %v2681_v49  ;;  %v2686_v10 = vsel %vm2685_vm0, %v2674_v62, %v2684_v4  ;;  %v2687_v11 = vsel %vm2424_vm11, %v2663_v63, 2147483647 }
 0x41f   :  { %v2690_v15 = vsel %vm2424_vm11, %v2664_v50, 2147483647  ;;  %v2693_v17 = vsel %vm2424_vm11, %v2665_v51, 2147483647  ;;  %v2670_v20 = vsel %vm2654_vm12, %v2638_v38, 128  ;;  %vm2688_vm1 = vcmp.lt.s32.totalorder %v2677_v14, %v2687_v11 }
 0x420   :  { %vm2691_vm2 = vcmp.lt.s32.totalorder %v2680_v6, %v2690_v15  ;;  %vm2694_vm3 = vcmp.lt.s32.totalorder %v2683_v7, %v2693_v17  ;;  %v2689_v19 = vsel %vm2688_vm1, %v2677_v14, %v2687_v11  ;;  %v2696_v25 = vsel %vm2424_vm11, %v2666_v53, 2147483647 }
 0x421   :  { %v2692_v22 = vsel %vm2691_vm2, %v2680_v6, %v2690_v15  ;;  %v2695_v24 = vsel %vm2694_vm3, %v2683_v7, %v2693_v17  ;;  %vm2697_vm4 = vcmp.lt.s32.totalorder %v2686_v10, %v2696_v25  ;;  %v2699_v12 = vsel %vm2424_vm11, %v2667_v54, 2147483647 }
 0x422   :  { %v2702_v27 = vsel %vm2424_vm11, %v2668_v55, 2147483647  ;;  %v2705_v29 = vsel %vm2424_vm11, %v2669_v56, 2147483647  ;;  %v2698_v30 = vsel %vm2697_vm4, %v2686_v10, %v2696_v25  ;;  %vm2700_vm5 = vcmp.lt.s32.totalorder %v2689_v19, %v2699_v12 }
 0x423   :  { %vm2703_vm6 = vcmp.lt.s32.totalorder %v2692_v22, %v2702_v27  ;;  %vm2706_vm7 = vcmp.lt.s32.totalorder %v2695_v24, %v2705_v29  ;;  %v2701_v31 = vsel %vm2700_vm5, %v2689_v19, %v2699_v12  ;;  %v2708_v34 = vsel %vm2424_vm11, %v2670_v20, 2147483647 }
 0x424   :  { %v2704_v32 = vsel %vm2703_vm6, %v2692_v22, %v2702_v27  ;;  %v2707_v33 = vsel %vm2706_vm7, %v2695_v24, %v2705_v29  ;;  %vm2709_vm8 = vcmp.lt.s32.totalorder %v2698_v30, %v2708_v34  ;;  %v2462_v2 = vsub.f32 %v3804_v16, %v3950_v28 }
 0x425   :  { %vm2711_vm9 = vcmp.lt.s32.totalorder %v2701_v31, %v2704_v32  ;;  %v2710_v36 = vsel %vm2709_vm8, %v2698_v30, %v2708_v34  ;;  %v2463_v39 = vsub.f32 %v3806_v3, %v3950_v28  ;;  %v2464_v40 = vsub.f32 %v3808_v23, %v3950_v28 }
 0x426   :  { %v2712_v38 = vsel %vm2711_vm9, %v2701_v31, %v2704_v32  ;;  %vm2713_vm10 = vcmp.lt.s32.totalorder %v2707_v33, %v2710_v36  ;;  %v2465_v41 = vsub.f32 %v3810_v13, %v3950_v28  ;;  %v2466_v44 = vsub.f32 %v3812_v18, %v3950_v28 }
 0x427   :  { %v2714_v42 = vsel %vm2713_vm10, %v2707_v33, %v2710_v36  ;;  %v2478_v45 = vmul.f32 1.442695, %v2462_v2  ;;  %v2480_v47 = vmul.f32 1.442695, %v2463_v39  ;;  %v2482_v16 = vmul.f32 1.442695, %v2464_v40 }
 0x428   :  { %vm2715_vm12 = vcmp.lt.s32.totalorder %v2712_v38, %v2714_v42  ;;  %v2467_v48 = vsub.f32 %v3823_v21, %v3950_v28  ;;  %v2484_v63 = vmul.f32 1.442695, %v2465_v41  ;;  %v2468_v23 = vsub.f32 %v3834_v26, %v3950_v28 }
 0x429   :  { %3257 = vpow2.f32 %v2478_v45  ;;  %v2716_v3 = vsel %vm2715_vm12, %v2712_v38, %v2714_v42  ;;  %v2486_v50 = vmul.f32 1.442695, %v2466_v44  ;;  %v2469_v13 = vsub.f32 %v3847_v35, %v3950_v28 }
 0x42a   :  { %3259 = vpow2.f32 %v2480_v47  ;;  %v2488_v18 = vmul.f32 1.442695, %v2467_v48  ;;  %v2717_v51 = vrot.slane %v2716_v3, 4  ;;  %v2470_v53 = vsub.f32 %v3859_v43, %v3950_v28 }
 0x42b   :  { %3261 = vpow2.f32 %v2482_v16  ;;  %v2490_v21 = vmul.f32 1.442695, %v2468_v23  ;;  %v2471_v55 = vsub.f32 %v3868_v52, %v3950_v28  ;;  %v2492_v26 = vmul.f32 1.442695, %v2469_v13 }
 0x42c   :  { %3263 = vpow2.f32 %v2484_v63  ;;  %vm2718_vm13 = vcmp.lt.s32.totalorder %v2716_v3, %v2717_v51  ;;  %v2472_v58 = vsub.f32 %v3876_v59, %v3950_v28  ;;  %v2494_v35 = vmul.f32 1.442695, %v2470_v53 }
 0x42d   :  { %3265 = vpow2.f32 %v2486_v50  ;;  %v2719_v54 = vsel %vm2718_vm13, %v2716_v3, %v2717_v51  ;;  %v2473_v43 = vsub.f32 %v3884_v1, %v3950_v28  ;;  %v2496_v0 = vmul.f32 1.442695, %v2471_v55 }
 0x42e   :  { %3267 = vpow2.f32 %v2488_v18  ;;  %v2720_v56 = vrot.slane %v2719_v54, 2  ;;  %v2474_v59 = vsub.f32 %v3891_v9, %v3950_v28  ;;  %vm2620_vm15 = vcmask 57344  }
 0x42f   :  { %3269 = vpow2.f32 %v2490_v21  ;;  %v2498_v6 = vmul.f32 1.442695, %v2472_v58  ;;  %v2475_v15 = vsub.f32 %v3898_v8, %v3950_v28  ;;  %v2500_v17 = vmul.f32 1.442695, %v2473_v43 }
 0x430   :  { %vm2721_vm14 = vcmp.lt.s32.totalorder %v2719_v54, %v2720_v56  ;;  %3271 = vpow2.f32 %v2492_v26 }
 0x431   :  { %v2722_v61 = vsel %vm2721_vm14, %v2719_v54, %v2720_v56  ;;  %3273 = vpow2.f32 %v2494_v35 }
 0x432   :  { %v2723_v46 = vrot.slane %v2722_v61, 1  ;;  %3275 = vpow2.f32 %v2496_v0 }
 0x433   :  { %v3258_v60 = vpop.eup %3257 }
 0x434   :  { %v3260_v62 = vpop.eup %3259  ;;  %v2510_v52 = vsel %vm2424_vm11, %v3258_v60, 0.0  ;;  %vm2724_vm0 = vcmp.lt.s32.totalorder %v2722_v61, %v2723_v46 }
 0x435   :  { %v3262_v49 = vpop.eup %3261  ;;  %v2511_v4 = vsel %vm2424_vm11, %v3260_v62, 0.0  ;;  %v2725_v10 = vsel %vm2724_vm0, %v2722_v61, %v2723_v46 }
 0x436   :  { %v3264_v14 = vpop.eup %3263  ;;  %v2512_v1 = vadd.f32 %v2511_v4, %v2510_v52  ;;  %v2513_v7 = vsel %vm2424_vm11, %v3262_v49, 0.0  ;;  %2726 = vst.msk [vmem:[#allocation4] sm:$0x1] %vm2620_vm15, %v2725_v10 }
 0x437   :  { %v3266_v11 = vpop.eup %3265  ;;  %v2515_v9 = vsel %vm2424_vm11, %v3264_v14, 0.0 }
 0x438   :  { %v2514_v20 = vadd.f32 %v2513_v7, %v2512_v1 }
 0x439   :  { %3302 = shalt.err (!%p3299_p4)
}
 0x43a   :  { %s3303_s11 = scalar_lea.hbm %s4089_s9, 16 }
 0x43b   :  { %p3304_p5 = scmp.ne.s32.totalorder %s4089_s9, %s3303_s11  ;;  %p3307_p6 = scmp.lt.u32.totalorder %s3303_s11, %s4089_s9 }
 0x43d   :  { %p3309_p7 = pnand %p3307_p6, %p3304_p5 }
 0x43f   :  { %3312 = shalt.err (!%p3309_p7)
}
 0x440   :  { %2746 = dma.vmem_to_hbm [thread:$0]  %s2744_s0, 16, %s4089_s9, [#allocation5]   ;;  %v3268_v8 = vpop.eup %3267  ;;  %v2476_v19 = vsub.f32 %v3925_v37, %v3950_v28  ;;  %3277 = vpow2.f32 %v2498_v6  ;;  %v2502_v22 = vmul.f32 1.442695, %v2474_v59  ;;  %v2516_v24 = vadd.f32 %v2515_v9, %v2514_v20 }
 0x441   :  { %v2517_v25 = vsel %vm2424_vm11, %v3266_v11, 0.0  ;;  %v3270_v12 = vpop.eup %3269  ;;  %v2477_v27 = vsub.f32 %v3942_v57, %v3950_v28  ;;  %3279 = vpow2.f32 %v2500_v17  ;;  %v2504_v29 = vmul.f32 1.442695, %v2475_v15  ;;  %s3343_s9 = smov [#allocation2]  }
 0x442   :  { %v2518_v30 = vadd.f32 %v2517_v25, %v2516_v24  ;;  %v2519_v31 = vsel %vm2424_vm11, %v3268_v8, 0.0  ;;  %v3272_v32 = vpop.eup %3271  ;;  %3281 = vpow2.f32 %v2502_v22  ;;  %v2506_v33 = vmul.f32 1.442695, %v2476_v19  ;;  %s2733_s3 = sshll.u32 %s3343_s9, 4  ;;  %s2734_s3 = int_to_ptr.vmem [resolvable:$true] %s2733_s3 }
 0x443   :  { %v2521_v37 = vsel %vm2424_vm11, %v3270_v12, 0.0  ;;  %v3274_v2 = vpop.eup %3273  ;;  %v2508_v36 = vmul.f32 1.442695, %v2477_v27  ;;  %3283 = vpow2.f32 %v2504_v29  ;;  %v2523_v39 = vsel %vm2424_vm11, %v3272_v32, 0.0  ;;  %s3313_s17 = scalar_lea.vmem %s2734_s3, 16  ;;  %s3317_s18 = scalar_lea.vmem %s2734_s3, 32 }
 0x444   :  { %v2520_v34 = vadd.f32 %v2519_v31, %v2518_v30  ;;  %v3276_v40 = vpop.eup %3275  ;;  %3285 = vpow2.f32 %v2506_v33  ;;  %v2525_v41 = vsel %vm2424_vm11, %v3274_v2, 0.0  ;;  %v2613_v62 = vrot.slane %v3948_v5, 4  ;;  %p3314_p8 = scmp.ne.s32.totalorder %s2734_s3, %s3313_s17  ;;  %p3318_p9 = scmp.lt.s32.totalorder %s2734_s3, %s2734_s3 }
 0x445   :  { %3287 = vpow2.f32 %v2508_v36  ;;  %v2527_v45 = vsel %vm2424_vm11, %v3276_v40, 0.0  ;;  %p3319_p10 = scmp.lt.s32.totalorder %s3317_s18, %s3313_s17 }
 0x446   :  { %v2522_v38 = vadd.f32 %v2521_v37, %v2520_v34  ;;  %v2614_v46 = vadd.f32 %v2613_v62, %v3948_v5 }
 0x447   :  { %p3320_p11 = por %p3319_p10, %p3318_p9 }
 0x448   :  { %v2524_v57 = vadd.f32 %v2523_v39, %v2522_v38  ;;  %v2615_v59 = vrot.slane %v2614_v46, 2 }
 0x449   :  { %p3321_p12 = pnand %p3320_p11, %p3314_p8 }
 0x44a   :  { %v3278_v42 = vpop.eup %3277  ;;  %v2526_v44 = vadd.f32 %v2525_v41, %v2524_v57  ;;  %v2616_v4 = vadd.f32 %v2615_v59, %v2614_v46 }
 0x44b   :  { %v3280_v47 = vpop.eup %3279  ;;  %v2529_v48 = vsel %vm2424_vm11, %v3278_v42, 0.0 }
 0x44c   :  { %v2528_v16 = vadd.f32 %v2527_v45, %v2526_v44  ;;  %v3282_v63 = vpop.eup %3281  ;;  %v2531_v23 = vsel %vm2424_vm11, %v3280_v47, 0.0  ;;  %v2617_v14 = vrot.slane %v2616_v4, 1 }
 0x44d   :  { %v3284_v50 = vpop.eup %3283  ;;  %v2533_v18 = vsel %vm2424_vm11, %v3282_v63, 0.0 }
 0x44e   :  { %v2530_v3 = vadd.f32 %v2529_v48, %v2528_v16  ;;  %v3286_v51 = vpop.eup %3285  ;;  %v2535_v21 = vsel %vm2424_vm11, %v3284_v50, 0.0  ;;  %v2618_v10 = vadd.f32 %v2617_v14, %v2616_v4 }
 0x44f   :  { %v3288_v54 = vpop.eup %3287  ;;  %v2537_v26 = vsel %vm2424_vm11, %v3286_v51, 0.0 }
 0x450   :  { %v2532_v13 = vadd.f32 %v2531_v23, %v2530_v3  ;;  %v2539_v58 = vsel %vm2424_vm11, %v3288_v54, 0.0 }
 0x452   :  { %v2534_v53 = vadd.f32 %v2533_v18, %v2532_v13 }
 0x454   :  { %v2536_v55 = vadd.f32 %v2535_v21, %v2534_v53 }
 0x456   :  { %v2538_v56 = vadd.f32 %v2537_v26, %v2536_v55 }
 0x458   :  { %v2540_v35 = vadd.f32 %v2539_v58, %v2538_v56 }
 0x45a   :  { %v2541_v60 = vrot.slane %v2540_v35, 4 }
 0x45c   :  { %v2542_v43 = vadd.f32 %v2541_v60, %v2540_v35 }
 0x45e   :  { %v2543_v61 = vrot.slane %v2542_v43, 2 }
 0x460   :  { %v2544_v0 = vadd.f32 %v2543_v61, %v2542_v43 }
 0x462   :  { %v2545_v52 = vrot.slane %v2544_v0, 1 }
 0x464   :  { %v2546_v49 = vadd.f32 %v2545_v52, %v2544_v0 }
 0x466   :  { %3289 = vlog2.f32 %v2546_v49 }
 0x470   :  { %v3290_v6 = vpop.eup %3289 }
 0x471   :  { %v2548_v1 = vmul.f32 0.6931472, %v3290_v6 }
 0x473   :  { %v2549_v7 = vadd.f32 %v2548_v1, %v3950_v28 }
 0x475   :  { %v2619_v11 = vsub.f32 %v2549_v7, %v2618_v10 }
 0x477   :  { %2621 = vst.msk [vmem:[#allocation2] sm:$0x1] %vm2620_vm15, %v2619_v11 }
 0x478   :  { %3324 = shalt.err (!%p3321_p12)
}
 0x479   :  { %s3325_s21 = scalar_lea.hbm %s4088_s8, 16 }
 0x47a   :  { %p3326_p13 = scmp.ne.s32.totalorder %s4088_s8, %s3325_s21  ;;  %p3329_p0 = scmp.lt.u32.totalorder %s3325_s21, %s4088_s8 }
 0x47c   :  { %p3331_p1 = pnand %p3329_p0, %p3326_p13 }
 0x47e   :  { %3334 = shalt.err (!%p3331_p1)
}
 0x47f   :  { %2736 = dma.vmem_to_hbm [thread:$0]  %s2734_s3, 16, %s4088_s8, [#allocation3]  }
 0x480   :  { %3335 = dma.done.wait [#allocation3], 16  }
 0x481   :  { %3336 = vsyncadd [#allocation3], 4294967280 }
 0x482   :  { %3337 = dma.done.wait [#allocation5], 16  }
 0x483   :  { %3338 = vsyncadd [#allocation5], 4294967280 }
 0x484   :  { %2753 = vsyncpa [#allocation3], 1 }
 0x485   :  { %2754 = vsyncpa [#allocation5], 1 }

</bundles_post_ra>
